<compile_context>
chip_gen: v7x
topology: tpu7x:2x2x1
jax: 0.10.0
libtpu: 0.0.40
codegen_flags: <defaults>
</compile_context>

<pallas_src>
import functools
import math

import jax
import jax.numpy as jnp
from jax.experimental import pallas as pl
from jax.experimental.pallas import tpu as pltpu

_F32 = jnp.float32
_BF16 = jnp.bfloat16


def _layernorm(x, gamma_2d, beta_2d, eps=1e-5):
    mu = jnp.mean(x, axis=-1, keepdims=True)
    var = jnp.mean((x - mu) ** 2, axis=-1, keepdims=True)
    return (x - mu) * jax.lax.rsqrt(var + eps) * gamma_2d + beta_2d


def _gelu_exact(x):
    # nn.GELU default (approximate='none'): 0.5*x*(1+erf(x/sqrt(2)))
    return 0.5 * x * (1.0 + jax.lax.erf(x * (1.0 / math.sqrt(2.0))))


def block_kernel(x_ref, mask_ref,
                 ln1_g_ref, ln1_b_ref,
                 wqkv_t_ref, bqkv_ref,
                 wo_t_ref, bo_ref,
                 ln2_g_ref, ln2_b_ref,
                 wfc_c_ref, bfc_c_ref, wproj_c_ref, bproj_ref,
                 out_ref,
                 attn_cat_ref, acc_ref,
                 *, num_heads):
    bt, L, C = x_ref.shape
    head_dim = C // num_heads
    rows = bt * L

    x = x_ref[...].reshape(rows, C)                       # (bt*L, C) f32

    # ---------------- attention branch ----------------
    xn = _layernorm(x, ln1_g_ref[...], ln1_b_ref[...])
    # one wide QKV matmul; 1/sqrt(head_dim) already folded into the q columns
    # of the weight / bias.  Cast the result to bf16 ONCE.
    qkv = (jnp.dot(xn.astype(_BF16), wqkv_t_ref[...],
                   preferred_element_type=_F32) + bqkv_ref[...]).astype(_BF16)

    mask = mask_ref[...]                                  # (L, L) additive mask

    # Per-sample / per-head scores, softmax, PV.  Each head's (L, Dh) output is
    # stored straight into the (bt*L, C) concat scratch (no functional
    # accumulator stays live across heads); ONE K=C out-projection runs below.
    for b in range(bt):                                   # static; bt is small
        r0 = b * L
        qkv_b = qkv[r0:r0 + L]                            # (L, 3C) bf16
        for h in range(num_heads):                        # static lane offsets
            lo = h * head_dim
            qh = qkv_b[:, lo:lo + head_dim]
            kh = qkv_b[:, C + lo:C + lo + head_dim]
            vh = qkv_b[:, 2 * C + lo:2 * C + lo + head_dim]

            s = jax.lax.dot_general(qh, kh, (((1,), (1,)), ((), ())),
                                    preferred_element_type=_F32) + mask
            s = s - jnp.max(s, axis=-1, keepdims=True)
            p = jnp.exp(s)                                # (L, L) f32
            l = jnp.sum(p, axis=-1, keepdims=True)        # (L, 1)
            oh = jnp.dot(p.astype(_BF16), vh,
                         preferred_element_type=_F32)     # (L, Dh)
            # post-PV normalization: (L, Dh) multiply instead of (L, L)
            oh = oh * pl.reciprocal(l, approx=True)
            attn_cat_ref[r0:r0 + L, lo:lo + head_dim] = oh

    # single full-contraction (K=C) out-projection over all heads & batch rows
    y = jnp.dot(attn_cat_ref[...].astype(_BF16), wo_t_ref[...],
                preferred_element_type=_F32) + bo_ref[...]
    x1 = x + y                                            # residual 1 (f32)

    # ---------------- MLP branch (hidden-dim chunked) ----------------
    xn2 = _layernorm(x1, ln2_g_ref[...], ln2_b_ref[...]).astype(_BF16)
    acc_ref[...] = x1 + bproj_ref[...]                    # residual-2 baseline

    n_chunks = wfc_c_ref.shape[0]

    def mlp_chunk(ci, carry):
        hdn = jnp.dot(xn2, wfc_c_ref[ci],
                      preferred_element_type=_F32) + bfc_c_ref[ci]
        hdn = _gelu_exact(hdn)                            # exact erf GELU, f32
        acc_ref[...] += jnp.dot(hdn.astype(_BF16), wproj_c_ref[ci],
                                preferred_element_type=_F32)
        return carry

    jax.lax.fori_loop(0, n_chunks, mlp_chunk, 0)

    out_ref[...] = acc_ref[...].reshape(bt, L, C).astype(out_ref.dtype)


def _tpu_vmem_capacity_bytes():
    try:
        return int(pltpu.get_tpu_info().vmem_capacity_bytes)
    except Exception:
        return 128 * 1024 * 1024


def _pick_hidden_chunk(mlp_width, vmem_cap_bytes):
    # smaller hidden chunks on 64 MiB (v7x-class) parts, wider on 128 MiB parts
    preferred = 256 if vmem_cap_bytes <= 64 * 1024 * 1024 else 512
    for c in (preferred, 512, 256, 128):
        if mlp_width % c == 0:
            return c
    return mlp_width


def _pick_batch_tile(N, L, num_heads, max_rows=256, max_head_unroll=32):
    """Largest divisor of N that raises matmul M / amortizes per-step overhead
    while keeping the static per-sample/per-head attention unroll bounded."""
    for cand in range(N, 0, -1):
        if N % cand:
            continue
        if cand == 1 or (cand * L <= max_rows
                         and cand * num_heads <= max_head_unroll):
            return cand
    return 1


def prepare_block_params(params, num_heads, vmem_cap_bytes=None):
    """One-time weight layout prep: transpose, fold attention scale, chunk the
    MLP weights, cast matmul weights to bf16 (biases / LN params stay f32)."""
    f32, bf16 = jnp.float32, jnp.bfloat16
    C = params['ln1_g'].shape[0]
    head_dim = C // num_heads
    scale = head_dim ** -0.5
    mlp_width = params['b_fc'].shape[0]
    if vmem_cap_bytes is None:
        vmem_cap_bytes = _tpu_vmem_capacity_bytes()
    chunk = _pick_hidden_chunk(mlp_width, vmem_cap_bytes)
    n_chunks = mlp_width // chunk

    # fold 1/sqrt(head_dim) into the q columns of W_qkv^T and of b_qkv
    col_scale = jnp.concatenate([jnp.full((C,), scale, f32),
                                 jnp.ones((2 * C,), f32)])
    wqkv_t = params['w_qkv'].astype(f32).T * col_scale[None, :]     # (C, 3C)
    bqkv = (params['b_qkv'].astype(f32) * col_scale).reshape(1, -1)

    wo_t = params['w_out'].astype(f32).T                            # (C, C)
    wfc_t = params['w_fc'].astype(f32).T                            # (C, F)
    wproj_t = params['w_proj'].astype(f32).T                        # (F, C)

    return {
        'ln1_g': params['ln1_g'].astype(f32).reshape(1, C),
        'ln1_b': params['ln1_b'].astype(f32).reshape(1, C),
        'wqkv_t': wqkv_t.astype(bf16),
        'bqkv': bqkv,
        'wo_t': wo_t.astype(bf16),
        'bo': params['b_out'].astype(f32).reshape(1, C),
        'ln2_g': params['ln2_g'].astype(f32).reshape(1, C),
        'ln2_b': params['ln2_b'].astype(f32).reshape(1, C),
        'wfc_c': wfc_t.reshape(C, n_chunks, chunk).transpose(1, 0, 2).astype(bf16),
        'bfc_c': params['b_fc'].astype(f32).reshape(n_chunks, 1, chunk),
        'wproj_c': wproj_t.reshape(n_chunks, chunk, C).astype(bf16),
        'bproj': params['b_proj'].astype(f32).reshape(1, C),
    }


def custom_residual_attention_block(x_lnc, prep, attn_mask, num_heads):
    """x_lnc: (L, N, C) float32. attn_mask: (L, L) additive float mask or None.
    `prep` is the output of prepare_block_params (weights already laid out)."""
    L, N, C = x_lnc.shape
    if attn_mask is None:
        attn_mask = jnp.zeros((L, L), jnp.float32)
    bt = _pick_batch_tile(N, L, num_heads)
    n_chunks, _, chunk = prep['wfc_c'].shape
    mlp_width = n_chunks * chunk

    x_nlc = jnp.transpose(x_lnc, (1, 0, 2))               # (N, L, C)

    args = [
        x_nlc,
        attn_mask.astype(jnp.float32),
        prep['ln1_g'], prep['ln1_b'],
        prep['wqkv_t'], prep['bqkv'],
        prep['wo_t'], prep['bo'],
        prep['ln2_g'], prep['ln2_b'],
        prep['wfc_c'], prep['bfc_c'], prep['wproj_c'], prep['bproj'],
    ]

    in_specs = [pl.BlockSpec((bt, L, C), lambda b: (b, 0, 0))]
    for a in args[1:]:
        # full-array block, constant index -> stays resident across the grid
        in_specs.append(pl.BlockSpec(a.shape, lambda b, _n=a.ndim: (0,) * _n))

    vmem_cap = _tpu_vmem_capacity_bytes()
    vmem_limit = min(int(vmem_cap * 3 // 4), 100 * 1024 * 1024)

    flops = int(N * L * (6 * C * C + 4 * L * C + 2 * C * C + 4 * C * mlp_width))
    transcendentals = int(N * (num_heads * L * L + L * mlp_width))
    bytes_accessed = int(
        2 * x_lnc.size * x_lnc.dtype.itemsize
        + attn_mask.size * 4
        + sum(int(a.size) * a.dtype.itemsize for a in args[2:]))

    out = pl.pallas_call(
        functools.partial(block_kernel, num_heads=num_heads),
        out_shape=jax.ShapeDtypeStruct((N, L, C), x_lnc.dtype),
        grid_spec=pltpu.PrefetchScalarGridSpec(
            num_scalar_prefetch=0,
            grid=(N // bt,),
            in_specs=in_specs,
            out_specs=pl.BlockSpec((bt, L, C), lambda b: (b, 0, 0)),
            scratch_shapes=[
                pltpu.VMEM((bt * L, C), jnp.float32),   # per-head concat
                pltpu.VMEM((bt * L, C), jnp.float32),   # residual-2 / MLP acc
            ],
        ),
        compiler_params=pltpu.CompilerParams(
            dimension_semantics=("parallel",),
            vmem_limit_bytes=vmem_limit,
        ),
        cost_estimate=pl.CostEstimate(flops=flops,
                                      transcendentals=transcendentals,
                                      bytes_accessed=bytes_accessed),
    )(*args)
    return jnp.transpose(out, (1, 0, 2))                  # back to (L, N, C)


def reference(x_lnc, params, mask, num_heads):
    """Pure-JAX mirror of the PyTorch forward. Matmul operands are cast to
    bf16 with f32 accumulation to mirror the kernel's precision policy."""
    L, N, C = x_lnc.shape
    Dh = C // num_heads
    bf16, f32 = jnp.bfloat16, jnp.float32

    def ln(x, g, b):
        mu = x.mean(-1, keepdims=True)
        var = ((x - mu) ** 2).mean(-1, keepdims=True)
        return (x - mu) / jnp.sqrt(var + 1e-5) * g + b

    def mm(a, w_t):
        return jnp.dot(a.astype(bf16), w_t.astype(bf16),
                       preferred_element_type=f32)

    xn = ln(x_lnc, params['ln1_g'], params['ln1_b'])
    qkv = mm(xn, params['w_qkv'].T) + params['b_qkv']    # (L, N, 3C)
    q, k, v = jnp.split(qkv, 3, axis=-1)

    def heads(t):                                        # (L,N,C)->(N,H,L,Dh)
        return t.reshape(L, N, num_heads, Dh).transpose(1, 2, 0, 3)

    qh = heads(q) * (Dh ** -0.5)
    kh, vh = heads(k), heads(v)
    attn = jnp.einsum('nhld,nhmd->nhlm', qh.astype(bf16), kh.astype(bf16),
                      preferred_element_type=f32) + mask
    attn = jax.nn.softmax(attn, axis=-1)
    y = jnp.einsum('nhlm,nhmd->nhld', attn.astype(bf16), vh.astype(bf16),
                   preferred_element_type=f32)
    y = y.transpose(2, 0, 1, 3).reshape(L, N, C)
    y = mm(y, params['w_out'].T) + params['b_out']
    x1 = x_lnc + y

    xn2 = ln(x1, params['ln2_g'], params['ln2_b'])
    h = mm(xn2, params['w_fc'].T) + params['b_fc']
    h = 0.5 * h * (1.0 + jax.lax.erf(h / jnp.sqrt(2.0)))
    m = mm(h, params['w_proj'].T) + params['b_proj']
    return x1 + m


def _make_params(key, C, n_head, mlp_width):
    ks = jax.random.split(key, 10)
    attn_scale = (C // n_head) ** -0.5
    return {
        'ln1_g': 1.0 + 0.1 * jax.random.normal(ks[0], (C,), jnp.float32),
        'ln1_b': 0.1 * jax.random.normal(ks[1], (C,), jnp.float32),
        'w_qkv': jax.random.normal(ks[2], (3 * C, C), jnp.float32) * attn_scale,
        'b_qkv': 0.01 * jax.random.normal(ks[3], (3 * C,), jnp.float32),
        'w_out': jax.random.normal(ks[4], (C, C), jnp.float32) * 0.05,
        'b_out': 0.01 * jax.random.normal(ks[5], (C,), jnp.float32),
        'ln2_g': 1.0 + 0.1 * jax.random.normal(ks[6], (C,), jnp.float32),
        'ln2_b': 0.1 * jax.random.normal(ks[7], (C,), jnp.float32),
        'w_fc': jax.random.normal(ks[8], (mlp_width, C), jnp.float32) * 0.05,
        'b_fc': jnp.zeros((mlp_width,), jnp.float32),
        'w_proj': jax.random.normal(ks[9], (C, mlp_width), jnp.float32) * 0.05,
        'b_proj': jnp.zeros((C,), jnp.float32),
    }


def _run_case(L, N, C, n_head, mlp_ratio, key):
    mlp_width = int(C * mlp_ratio)
    kp, kx = jax.random.split(key)
    params = _make_params(kp, C, n_head, mlp_width)
    x = jax.random.normal(kx, (L, N, C), jnp.float32)
    causal = jnp.triu(jnp.full((L, L), -1e9, jnp.float32), k=1)

    prep = prepare_block_params(params, n_head)          # one-time layout prep
    out = custom_residual_attention_block(x, prep, causal, n_head)
    out = jax.block_until_ready(out)

    ref = reference(x, params, causal, n_head)
    assert out.shape == (L, N, C)
    err = float(jnp.max(jnp.abs(out - ref)))
    assert jnp.allclose(out, ref, rtol=5e-2, atol=5e-2), f"max abs err {err}"


if __name__ == "__main__":
    key = jax.random.PRNGKey(0)
    k1, k2 = jax.random.split(key)
    # tiny config (matches the spec's small-shape requirement)
    _run_case(L=8, N=2, C=32, n_head=4, mlp_ratio=4.0, key=k1)
    # slightly larger config to exercise batch tiling / head slicing / chunking
    _run_case(L=16, N=2, C=128, n_head=4, mlp_ratio=4.0, key=k2)
    print("KERNEL_OK")
</pallas_src>

<mosaic_0001>
module attributes {stable_mosaic.version = 11 : i64} {
  func.func @block_kernel(%arg0: i32, %arg1: memref<2x8x32xf32, #tpu.memory_space<vmem>>, %arg2: memref<8x8xf32, #tpu.memory_space<vmem>>, %arg3: memref<1x32xf32, #tpu.memory_space<vmem>>, %arg4: memref<1x32xf32, #tpu.memory_space<vmem>>, %arg5: memref<32x96xbf16, #tpu.memory_space<vmem>>, %arg6: memref<1x96xf32, #tpu.memory_space<vmem>>, %arg7: memref<32x32xbf16, #tpu.memory_space<vmem>>, %arg8: memref<1x32xf32, #tpu.memory_space<vmem>>, %arg9: memref<1x32xf32, #tpu.memory_space<vmem>>, %arg10: memref<1x32xf32, #tpu.memory_space<vmem>>, %arg11: memref<1x32x128xbf16, #tpu.memory_space<vmem>>, %arg12: memref<1x1x128xf32, #tpu.memory_space<vmem>>, %arg13: memref<1x128x32xbf16, #tpu.memory_space<vmem>>, %arg14: memref<1x32xf32, #tpu.memory_space<vmem>>, %arg15: memref<2x8x32xf32, #tpu.memory_space<vmem>>, %arg16: memref<16x32xf32, #tpu.memory_space<vmem>>, %arg17: memref<16x32xf32, #tpu.memory_space<vmem>>) attributes {dimension_semantics = [#tpu.dimension_semantics<parallel>], iteration_bounds = array<i64: 1>, scalar_prefetch = 0 : i64, scratch_operands = 2 : i64, tpu.core_type = #tpu.core_type<tc>, window_params = [{transform_indices = @transform_0, window_bounds = array<i64: 2, 8, 32>}, {pipeline_mode = #tpu.pipeline_mode<synchronous>, transform_indices = @transform_1, window_bounds = array<i64: 8, 8>}, {pipeline_mode = #tpu.pipeline_mode<synchronous>, transform_indices = @transform_2, window_bounds = array<i64: 1, 32>}, {pipeline_mode = #tpu.pipeline_mode<synchronous>, transform_indices = @transform_3, window_bounds = array<i64: 1, 32>}, {pipeline_mode = #tpu.pipeline_mode<synchronous>, transform_indices = @transform_4, window_bounds = array<i64: 32, 96>}, {pipeline_mode = #tpu.pipeline_mode<synchronous>, transform_indices = @transform_5, window_bounds = array<i64: 1, 96>}, {pipeline_mode = #tpu.pipeline_mode<synchronous>, transform_indices = @transform_6, window_bounds = array<i64: 32, 32>}, {pipeline_mode = #tpu.pipeline_mode<synchronous>, transform_indices = @transform_7, window_bounds = array<i64: 1, 32>}, {pipeline_mode = #tpu.pipeline_mode<synchronous>, transform_indices = @transform_8, window_bounds = array<i64: 1, 32>}, {pipeline_mode = #tpu.pipeline_mode<synchronous>, transform_indices = @transform_9, window_bounds = array<i64: 1, 32>}, {pipeline_mode = #tpu.pipeline_mode<synchronous>, transform_indices = @transform_10, window_bounds = array<i64: 1, 32, 128>}, {pipeline_mode = #tpu.pipeline_mode<synchronous>, transform_indices = @transform_11, window_bounds = array<i64: 1, 1, 128>}, {pipeline_mode = #tpu.pipeline_mode<synchronous>, transform_indices = @transform_12, window_bounds = array<i64: 1, 128, 32>}, {pipeline_mode = #tpu.pipeline_mode<synchronous>, transform_indices = @transform_13, window_bounds = array<i64: 1, 32>}, {transform_indices = @transform_14, window_bounds = array<i64: 2, 8, 32>}]} {
    %c0 = arith.constant 0 : index
    %c0_0 = arith.constant 0 : index
    %c0_1 = arith.constant 0 : index
    %0 = vector.load %arg1[%c0, %c0_0, %c0_1] : memref<2x8x32xf32, #tpu.memory_space<vmem>>, vector<2x8x32xf32>
    %1 = vector.shape_cast %0 : vector<2x8x32xf32> to vector<16x32xf32>
    %c0_2 = arith.constant 0 : index
    %c0_3 = arith.constant 0 : index
    %2 = vector.load %arg3[%c0_2, %c0_3] : memref<1x32xf32, #tpu.memory_space<vmem>>, vector<1x32xf32>
    %c0_4 = arith.constant 0 : index
    %c0_5 = arith.constant 0 : index
    %3 = vector.load %arg4[%c0_4, %c0_5] : memref<1x32xf32, #tpu.memory_space<vmem>>, vector<1x32xf32>
    %cst = arith.constant dense<0.000000e+00> : vector<16xf32>
    %4 = vector.multi_reduction <add>, %1, %cst [1] : vector<16x32xf32> to vector<16xf32>
    %5 = vector.shape_cast %4 : vector<16xf32> to vector<16x1xf32>
    %cst_6 = arith.constant 3.200000e+01 : f32
    %6 = vector.broadcast %cst_6 : f32 to vector<16x1xf32>
    %7 = arith.divf %5, %6 : vector<16x1xf32>
    %8 = vector.broadcast %7 : vector<16x1xf32> to vector<16x32xf32>
    %9 = arith.subf %1, %8 : vector<16x32xf32>
    %10 = arith.mulf %9, %9 : vector<16x32xf32>
    %cst_7 = arith.constant dense<0.000000e+00> : vector<16xf32>
    %11 = vector.multi_reduction <add>, %10, %cst_7 [1] : vector<16x32xf32> to vector<16xf32>
    %12 = vector.shape_cast %11 : vector<16xf32> to vector<16x1xf32>
    %cst_8 = arith.constant 3.200000e+01 : f32
    %13 = vector.broadcast %cst_8 : f32 to vector<16x1xf32>
    %14 = arith.divf %12, %13 : vector<16x1xf32>
    %15 = vector.broadcast %7 : vector<16x1xf32> to vector<16x32xf32>
    %16 = arith.subf %1, %15 : vector<16x32xf32>
    %cst_9 = arith.constant 9.99999974E-6 : f32
    %17 = vector.broadcast %cst_9 : f32 to vector<16x1xf32>
    %18 = arith.addf %14, %17 : vector<16x1xf32>
    %19 = math.rsqrt %18 : vector<16x1xf32>
    %20 = vector.broadcast %19 : vector<16x1xf32> to vector<16x32xf32>
    %21 = arith.mulf %16, %20 : vector<16x32xf32>
    %22 = vector.broadcast %2 : vector<1x32xf32> to vector<16x32xf32>
    %23 = arith.mulf %21, %22 : vector<16x32xf32>
    %24 = vector.broadcast %3 : vector<1x32xf32> to vector<16x32xf32>
    %25 = arith.addf %23, %24 : vector<16x32xf32>
    %26 = arith.truncf %25 : vector<16x32xf32> to vector<16x32xbf16>
    %c0_10 = arith.constant 0 : index
    %c0_11 = arith.constant 0 : index
    %27 = vector.load %arg5[%c0_10, %c0_11] : memref<32x96xbf16, #tpu.memory_space<vmem>>, vector<32x96xbf16>
    %cst_12 = arith.constant dense<0.000000e+00> : vector<16x96xf32>
    %28 = tpu.matmul %26, %27, %cst_12 {dimension_numbers = #tpu.dot_dimension_numbers<[1], [0], [0], [1], [0, 0, 1, 1], [], []>} : vector<16x32xbf16>, vector<32x96xbf16>, vector<16x96xf32> -> vector<16x96xf32>
    %c0_13 = arith.constant 0 : index
    %c0_14 = arith.constant 0 : index
    %29 = vector.load %arg6[%c0_13, %c0_14] : memref<1x96xf32, #tpu.memory_space<vmem>>, vector<1x96xf32>
    %30 = vector.broadcast %29 : vector<1x96xf32> to vector<16x96xf32>
    %31 = arith.addf %28, %30 : vector<16x96xf32>
    %32 = arith.truncf %31 : vector<16x96xf32> to vector<16x96xbf16>
    %c0_15 = arith.constant 0 : index
    %c0_16 = arith.constant 0 : index
    %33 = vector.load %arg2[%c0_15, %c0_16] : memref<8x8xf32, #tpu.memory_space<vmem>>, vector<8x8xf32>
    %34 = vector.extract_strided_slice %32 {offsets = [0, 0], sizes = [8, 96], strides = [1, 1]} : vector<16x96xbf16> to vector<8x96xbf16>
    %35 = vector.extract_strided_slice %34 {offsets = [0, 0], sizes = [8, 8], strides = [1, 1]} : vector<8x96xbf16> to vector<8x8xbf16>
    %36 = vector.extract_strided_slice %34 {offsets = [0, 32], sizes = [8, 8], strides = [1, 1]} : vector<8x96xbf16> to vector<8x8xbf16>
    %37 = vector.extract_strided_slice %34 {offsets = [0, 64], sizes = [8, 8], strides = [1, 1]} : vector<8x96xbf16> to vector<8x8xbf16>
    %cst_17 = arith.constant dense<0.000000e+00> : vector<8x8xf32>
    %38 = tpu.matmul %35, %36, %cst_17 {dimension_numbers = #tpu.dot_dimension_numbers<[1], [1], [0], [0], [0, 0, 1, 0], [], []>} : vector<8x8xbf16>, vector<8x8xbf16>, vector<8x8xf32> -> vector<8x8xf32>
    %39 = arith.addf %38, %33 : vector<8x8xf32>
    %cst_18 = arith.constant dense<0xFF800000> : vector<8xf32>
    %40 = vector.multi_reduction <maximumf>, %39, %cst_18 [1] : vector<8x8xf32> to vector<8xf32>
    %41 = vector.shape_cast %40 : vector<8xf32> to vector<8x1xf32>
    %42 = vector.broadcast %41 : vector<8x1xf32> to vector<8x8xf32>
    %43 = arith.subf %39, %42 : vector<8x8xf32>
    %44 = math.exp %43 : vector<8x8xf32>
    %cst_19 = arith.constant dense<0.000000e+00> : vector<8xf32>
    %45 = vector.multi_reduction <add>, %44, %cst_19 [1] : vector<8x8xf32> to vector<8xf32>
    %46 = vector.shape_cast %45 : vector<8xf32> to vector<8x1xf32>
    %47 = arith.truncf %44 : vector<8x8xf32> to vector<8x8xbf16>
    %cst_20 = arith.constant dense<0.000000e+00> : vector<8x8xf32>
    %48 = tpu.matmul %47, %37, %cst_20 {dimension_numbers = #tpu.dot_dimension_numbers<[1], [0], [0], [1], [0, 0, 1, 1], [], []>} : vector<8x8xbf16>, vector<8x8xbf16>, vector<8x8xf32> -> vector<8x8xf32>
    %49 = tpu.reciprocal %46 {approx = true} : vector<8x1xf32> -> vector<8x1xf32>
    %50 = vector.broadcast %49 : vector<8x1xf32> to vector<8x8xf32>
    %51 = arith.mulf %48, %50 : vector<8x8xf32>
    %c0_21 = arith.constant 0 : index
    %c0_22 = arith.constant 0 : index
    %52 = vector.load %arg16[%c0_21, %c0_22] : memref<16x32xf32, #tpu.memory_space<vmem>>, vector<8x8xf32>
    tpu.vector_store %arg16[%c0_21, %c0_22], %51 {strides = array<i32>} : memref<16x32xf32, #tpu.memory_space<vmem>>, vector<8x8xf32>,
    %53 = vector.extract_strided_slice %34 {offsets = [0, 8], sizes = [8, 8], strides = [1, 1]} : vector<8x96xbf16> to vector<8x8xbf16>
    %54 = vector.extract_strided_slice %34 {offsets = [0, 40], sizes = [8, 8], strides = [1, 1]} : vector<8x96xbf16> to vector<8x8xbf16>
    %55 = vector.extract_strided_slice %34 {offsets = [0, 72], sizes = [8, 8], strides = [1, 1]} : vector<8x96xbf16> to vector<8x8xbf16>
    %cst_23 = arith.constant dense<0.000000e+00> : vector<8x8xf32>
    %56 = tpu.matmul %53, %54, %cst_23 {dimension_numbers = #tpu.dot_dimension_numbers<[1], [1], [0], [0], [0, 0, 1, 0], [], []>} : vector<8x8xbf16>, vector<8x8xbf16>, vector<8x8xf32> -> vector<8x8xf32>
    %57 = arith.addf %56, %33 : vector<8x8xf32>
    %cst_24 = arith.constant dense<0xFF800000> : vector<8xf32>
    %58 = vector.multi_reduction <maximumf>, %57, %cst_24 [1] : vector<8x8xf32> to vector<8xf32>
    %59 = vector.shape_cast %58 : vector<8xf32> to vector<8x1xf32>
    %60 = vector.broadcast %59 : vector<8x1xf32> to vector<8x8xf32>
    %61 = arith.subf %57, %60 : vector<8x8xf32>
    %62 = math.exp %61 : vector<8x8xf32>
    %cst_25 = arith.constant dense<0.000000e+00> : vector<8xf32>
    %63 = vector.multi_reduction <add>, %62, %cst_25 [1] : vector<8x8xf32> to vector<8xf32>
    %64 = vector.shape_cast %63 : vector<8xf32> to vector<8x1xf32>
    %65 = arith.truncf %62 : vector<8x8xf32> to vector<8x8xbf16>
    %cst_26 = arith.constant dense<0.000000e+00> : vector<8x8xf32>
    %66 = tpu.matmul %65, %55, %cst_26 {dimension_numbers = #tpu.dot_dimension_numbers<[1], [0], [0], [1], [0, 0, 1, 1], [], []>} : vector<8x8xbf16>, vector<8x8xbf16>, vector<8x8xf32> -> vector<8x8xf32>
    %67 = tpu.reciprocal %64 {approx = true} : vector<8x1xf32> -> vector<8x1xf32>
    %68 = vector.broadcast %67 : vector<8x1xf32> to vector<8x8xf32>
    %69 = arith.mulf %66, %68 : vector<8x8xf32>
    %c0_27 = arith.constant 0 : index
    %c8 = arith.constant 8 : index
    %70 = vector.load %arg16[%c0_27, %c8] : memref<16x32xf32, #tpu.memory_space<vmem>>, vector<8x8xf32>
    tpu.vector_store %arg16[%c0_27, %c8], %69 {strides = array<i32>} : memref<16x32xf32, #tpu.memory_space<vmem>>, vector<8x8xf32>,
    %71 = vector.extract_strided_slice %34 {offsets = [0, 16], sizes = [8, 8], strides = [1, 1]} : vector<8x96xbf16> to vector<8x8xbf16>
    %72 = vector.extract_strided_slice %34 {offsets = [0, 48], sizes = [8, 8], strides = [1, 1]} : vector<8x96xbf16> to vector<8x8xbf16>
    %73 = vector.extract_strided_slice %34 {offsets = [0, 80], sizes = [8, 8], strides = [1, 1]} : vector<8x96xbf16> to vector<8x8xbf16>
    %cst_28 = arith.constant dense<0.000000e+00> : vector<8x8xf32>
    %74 = tpu.matmul %71, %72, %cst_28 {dimension_numbers = #tpu.dot_dimension_numbers<[1], [1], [0], [0], [0, 0, 1, 0], [], []>} : vector<8x8xbf16>, vector<8x8xbf16>, vector<8x8xf32> -> vector<8x8xf32>
    %75 = arith.addf %74, %33 : vector<8x8xf32>
    %cst_29 = arith.constant dense<0xFF800000> : vector<8xf32>
    %76 = vector.multi_reduction <maximumf>, %75, %cst_29 [1] : vector<8x8xf32> to vector<8xf32>
    %77 = vector.shape_cast %76 : vector<8xf32> to vector<8x1xf32>
    %78 = vector.broadcast %77 : vector<8x1xf32> to vector<8x8xf32>
    %79 = arith.subf %75, %78 : vector<8x8xf32>
    %80 = math.exp %79 : vector<8x8xf32>
    %cst_30 = arith.constant dense<0.000000e+00> : vector<8xf32>
    %81 = vector.multi_reduction <add>, %80, %cst_30 [1] : vector<8x8xf32> to vector<8xf32>
    %82 = vector.shape_cast %81 : vector<8xf32> to vector<8x1xf32>
    %83 = arith.truncf %80 : vector<8x8xf32> to vector<8x8xbf16>
    %cst_31 = arith.constant dense<0.000000e+00> : vector<8x8xf32>
    %84 = tpu.matmul %83, %73, %cst_31 {dimension_numbers = #tpu.dot_dimension_numbers<[1], [0], [0], [1], [0, 0, 1, 1], [], []>} : vector<8x8xbf16>, vector<8x8xbf16>, vector<8x8xf32> -> vector<8x8xf32>
    %85 = tpu.reciprocal %82 {approx = true} : vector<8x1xf32> -> vector<8x1xf32>
    %86 = vector.broadcast %85 : vector<8x1xf32> to vector<8x8xf32>
    %87 = arith.mulf %84, %86 : vector<8x8xf32>
    %c0_32 = arith.constant 0 : index
    %c16 = arith.constant 16 : index
    %88 = vector.load %arg16[%c0_32, %c16] : memref<16x32xf32, #tpu.memory_space<vmem>>, vector<8x8xf32>
    tpu.vector_store %arg16[%c0_32, %c16], %87 {strides = array<i32>} : memref<16x32xf32, #tpu.memory_space<vmem>>, vector<8x8xf32>,
    %89 = vector.extract_strided_slice %34 {offsets = [0, 24], sizes = [8, 8], strides = [1, 1]} : vector<8x96xbf16> to vector<8x8xbf16>
    %90 = vector.extract_strided_slice %34 {offsets = [0, 56], sizes = [8, 8], strides = [1, 1]} : vector<8x96xbf16> to vector<8x8xbf16>
    %91 = vector.extract_strided_slice %34 {offsets = [0, 88], sizes = [8, 8], strides = [1, 1]} : vector<8x96xbf16> to vector<8x8xbf16>
    %cst_33 = arith.constant dense<0.000000e+00> : vector<8x8xf32>
    %92 = tpu.matmul %89, %90, %cst_33 {dimension_numbers = #tpu.dot_dimension_numbers<[1], [1], [0], [0], [0, 0, 1, 0], [], []>} : vector<8x8xbf16>, vector<8x8xbf16>, vector<8x8xf32> -> vector<8x8xf32>
    %93 = arith.addf %92, %33 : vector<8x8xf32>
    %cst_34 = arith.constant dense<0xFF800000> : vector<8xf32>
    %94 = vector.multi_reduction <maximumf>, %93, %cst_34 [1] : vector<8x8xf32> to vector<8xf32>
    %95 = vector.shape_cast %94 : vector<8xf32> to vector<8x1xf32>
    %96 = vector.broadcast %95 : vector<8x1xf32> to vector<8x8xf32>
    %97 = arith.subf %93, %96 : vector<8x8xf32>
    %98 = math.exp %97 : vector<8x8xf32>
    %cst_35 = arith.constant dense<0.000000e+00> : vector<8xf32>
    %99 = vector.multi_reduction <add>, %98, %cst_35 [1] : vector<8x8xf32> to vector<8xf32>
    %100 = vector.shape_cast %99 : vector<8xf32> to vector<8x1xf32>
    %101 = arith.truncf %98 : vector<8x8xf32> to vector<8x8xbf16>
    %cst_36 = arith.constant dense<0.000000e+00> : vector<8x8xf32>
    %102 = tpu.matmul %101, %91, %cst_36 {dimension_numbers = #tpu.dot_dimension_numbers<[1], [0], [0], [1], [0, 0, 1, 1], [], []>} : vector<8x8xbf16>, vector<8x8xbf16>, vector<8x8xf32> -> vector<8x8xf32>
    %103 = tpu.reciprocal %100 {approx = true} : vector<8x1xf32> -> vector<8x1xf32>
    %104 = vector.broadcast %103 : vector<8x1xf32> to vector<8x8xf32>
    %105 = arith.mulf %102, %104 : vector<8x8xf32>
    %c0_37 = arith.constant 0 : index
    %c24 = arith.constant 24 : index
    %106 = vector.load %arg16[%c0_37, %c24] : memref<16x32xf32, #tpu.memory_space<vmem>>, vector<8x8xf32>
    tpu.vector_store %arg16[%c0_37, %c24], %105 {strides = array<i32>} : memref<16x32xf32, #tpu.memory_space<vmem>>, vector<8x8xf32>,
    %107 = vector.extract_strided_slice %32 {offsets = [8, 0], sizes = [8, 96], strides = [1, 1]} : vector<16x96xbf16> to vector<8x96xbf16>
    %108 = vector.extract_strided_slice %107 {offsets = [0, 0], sizes = [8, 8], strides = [1, 1]} : vector<8x96xbf16> to vector<8x8xbf16>
    %109 = vector.extract_strided_slice %107 {offsets = [0, 32], sizes = [8, 8], strides = [1, 1]} : vector<8x96xbf16> to vector<8x8xbf16>
    %110 = vector.extract_strided_slice %107 {offsets = [0, 64], sizes = [8, 8], strides = [1, 1]} : vector<8x96xbf16> to vector<8x8xbf16>
    %cst_38 = arith.constant dense<0.000000e+00> : vector<8x8xf32>
    %111 = tpu.matmul %108, %109, %cst_38 {dimension_numbers = #tpu.dot_dimension_numbers<[1], [1], [0], [0], [0, 0, 1, 0], [], []>} : vector<8x8xbf16>, vector<8x8xbf16>, vector<8x8xf32> -> vector<8x8xf32>
    %112 = arith.addf %111, %33 : vector<8x8xf32>
    %cst_39 = arith.constant dense<0xFF800000> : vector<8xf32>
    %113 = vector.multi_reduction <maximumf>, %112, %cst_39 [1] : vector<8x8xf32> to vector<8xf32>
    %114 = vector.shape_cast %113 : vector<8xf32> to vector<8x1xf32>
    %115 = vector.broadcast %114 : vector<8x1xf32> to vector<8x8xf32>
    %116 = arith.subf %112, %115 : vector<8x8xf32>
    %117 = math.exp %116 : vector<8x8xf32>
    %cst_40 = arith.constant dense<0.000000e+00> : vector<8xf32>
    %118 = vector.multi_reduction <add>, %117, %cst_40 [1] : vector<8x8xf32> to vector<8xf32>
    %119 = vector.shape_cast %118 : vector<8xf32> to vector<8x1xf32>
    %120 = arith.truncf %117 : vector<8x8xf32> to vector<8x8xbf16>
    %cst_41 = arith.constant dense<0.000000e+00> : vector<8x8xf32>
    %121 = tpu.matmul %120, %110, %cst_41 {dimension_numbers = #tpu.dot_dimension_numbers<[1], [0], [0], [1], [0, 0, 1, 1], [], []>} : vector<8x8xbf16>, vector<8x8xbf16>, vector<8x8xf32> -> vector<8x8xf32>
    %122 = tpu.reciprocal %119 {approx = true} : vector<8x1xf32> -> vector<8x1xf32>
    %123 = vector.broadcast %122 : vector<8x1xf32> to vector<8x8xf32>
    %124 = arith.mulf %121, %123 : vector<8x8xf32>
    %c8_42 = arith.constant 8 : index
    %c0_43 = arith.constant 0 : index
    %125 = vector.load %arg16[%c8_42, %c0_43] : memref<16x32xf32, #tpu.memory_space<vmem>>, vector<8x8xf32>
    tpu.vector_store %arg16[%c8_42, %c0_43], %124 {strides = array<i32>} : memref<16x32xf32, #tpu.memory_space<vmem>>, vector<8x8xf32>,
    %126 = vector.extract_strided_slice %107 {offsets = [0, 8], sizes = [8, 8], strides = [1, 1]} : vector<8x96xbf16> to vector<8x8xbf16>
    %127 = vector.extract_strided_slice %107 {offsets = [0, 40], sizes = [8, 8], strides = [1, 1]} : vector<8x96xbf16> to vector<8x8xbf16>
    %128 = vector.extract_strided_slice %107 {offsets = [0, 72], sizes = [8, 8], strides = [1, 1]} : vector<8x96xbf16> to vector<8x8xbf16>
    %cst_44 = arith.constant dense<0.000000e+00> : vector<8x8xf32>
    %129 = tpu.matmul %126, %127, %cst_44 {dimension_numbers = #tpu.dot_dimension_numbers<[1], [1], [0], [0], [0, 0, 1, 0], [], []>} : vector<8x8xbf16>, vector<8x8xbf16>, vector<8x8xf32> -> vector<8x8xf32>
    %130 = arith.addf %129, %33 : vector<8x8xf32>
    %cst_45 = arith.constant dense<0xFF800000> : vector<8xf32>
    %131 = vector.multi_reduction <maximumf>, %130, %cst_45 [1] : vector<8x8xf32> to vector<8xf32>
    %132 = vector.shape_cast %131 : vector<8xf32> to vector<8x1xf32>
    %133 = vector.broadcast %132 : vector<8x1xf32> to vector<8x8xf32>
    %134 = arith.subf %130, %133 : vector<8x8xf32>
    %135 = math.exp %134 : vector<8x8xf32>
    %cst_46 = arith.constant dense<0.000000e+00> : vector<8xf32>
    %136 = vector.multi_reduction <add>, %135, %cst_46 [1] : vector<8x8xf32> to vector<8xf32>
    %137 = vector.shape_cast %136 : vector<8xf32> to vector<8x1xf32>
    %138 = arith.truncf %135 : vector<8x8xf32> to vector<8x8xbf16>
    %cst_47 = arith.constant dense<0.000000e+00> : vector<8x8xf32>
    %139 = tpu.matmul %138, %128, %cst_47 {dimension_numbers = #tpu.dot_dimension_numbers<[1], [0], [0], [1], [0, 0, 1, 1], [], []>} : vector<8x8xbf16>, vector<8x8xbf16>, vector<8x8xf32> -> vector<8x8xf32>
    %140 = tpu.reciprocal %137 {approx = true} : vector<8x1xf32> -> vector<8x1xf32>
    %141 = vector.broadcast %140 : vector<8x1xf32> to vector<8x8xf32>
    %142 = arith.mulf %139, %141 : vector<8x8xf32>
    %c8_48 = arith.constant 8 : index
    %c8_49 = arith.constant 8 : index
    %143 = vector.load %arg16[%c8_48, %c8_49] : memref<16x32xf32, #tpu.memory_space<vmem>>, vector<8x8xf32>
    tpu.vector_store %arg16[%c8_48, %c8_49], %142 {strides = array<i32>} : memref<16x32xf32, #tpu.memory_space<vmem>>, vector<8x8xf32>,
    %144 = vector.extract_strided_slice %107 {offsets = [0, 16], sizes = [8, 8], strides = [1, 1]} : vector<8x96xbf16> to vector<8x8xbf16>
    %145 = vector.extract_strided_slice %107 {offsets = [0, 48], sizes = [8, 8], strides = [1, 1]} : vector<8x96xbf16> to vector<8x8xbf16>
    %146 = vector.extract_strided_slice %107 {offsets = [0, 80], sizes = [8, 8], strides = [1, 1]} : vector<8x96xbf16> to vector<8x8xbf16>
    %cst_50 = arith.constant dense<0.000000e+00> : vector<8x8xf32>
    %147 = tpu.matmul %144, %145, %cst_50 {dimension_numbers = #tpu.dot_dimension_numbers<[1], [1], [0], [0], [0, 0, 1, 0], [], []>} : vector<8x8xbf16>, vector<8x8xbf16>, vector<8x8xf32> -> vector<8x8xf32>
    %148 = arith.addf %147, %33 : vector<8x8xf32>
    %cst_51 = arith.constant dense<0xFF800000> : vector<8xf32>
    %149 = vector.multi_reduction <maximumf>, %148, %cst_51 [1] : vector<8x8xf32> to vector<8xf32>
    %150 = vector.shape_cast %149 : vector<8xf32> to vector<8x1xf32>
    %151 = vector.broadcast %150 : vector<8x1xf32> to vector<8x8xf32>
    %152 = arith.subf %148, %151 : vector<8x8xf32>
    %153 = math.exp %152 : vector<8x8xf32>
    %cst_52 = arith.constant dense<0.000000e+00> : vector<8xf32>
    %154 = vector.multi_reduction <add>, %153, %cst_52 [1] : vector<8x8xf32> to vector<8xf32>
    %155 = vector.shape_cast %154 : vector<8xf32> to vector<8x1xf32>
    %156 = arith.truncf %153 : vector<8x8xf32> to vector<8x8xbf16>
    %cst_53 = arith.constant dense<0.000000e+00> : vector<8x8xf32>
    %157 = tpu.matmul %156, %146, %cst_53 {dimension_numbers = #tpu.dot_dimension_numbers<[1], [0], [0], [1], [0, 0, 1, 1], [], []>} : vector<8x8xbf16>, vector<8x8xbf16>, vector<8x8xf32> -> vector<8x8xf32>
    %158 = tpu.reciprocal %155 {approx = true} : vector<8x1xf32> -> vector<8x1xf32>
    %159 = vector.broadcast %158 : vector<8x1xf32> to vector<8x8xf32>
    %160 = arith.mulf %157, %159 : vector<8x8xf32>
    %c8_54 = arith.constant 8 : index
    %c16_55 = arith.constant 16 : index
    %161 = vector.load %arg16[%c8_54, %c16_55] : memref<16x32xf32, #tpu.memory_space<vmem>>, vector<8x8xf32>
    tpu.vector_store %arg16[%c8_54, %c16_55], %160 {strides = array<i32>} : memref<16x32xf32, #tpu.memory_space<vmem>>, vector<8x8xf32>,
    %162 = vector.extract_strided_slice %107 {offsets = [0, 24], sizes = [8, 8], strides = [1, 1]} : vector<8x96xbf16> to vector<8x8xbf16>
    %163 = vector.extract_strided_slice %107 {offsets = [0, 56], sizes = [8, 8], strides = [1, 1]} : vector<8x96xbf16> to vector<8x8xbf16>
    %164 = vector.extract_strided_slice %107 {offsets = [0, 88], sizes = [8, 8], strides = [1, 1]} : vector<8x96xbf16> to vector<8x8xbf16>
    %cst_56 = arith.constant dense<0.000000e+00> : vector<8x8xf32>
    %165 = tpu.matmul %162, %163, %cst_56 {dimension_numbers = #tpu.dot_dimension_numbers<[1], [1], [0], [0], [0, 0, 1, 0], [], []>} : vector<8x8xbf16>, vector<8x8xbf16>, vector<8x8xf32> -> vector<8x8xf32>
    %166 = arith.addf %165, %33 : vector<8x8xf32>
    %cst_57 = arith.constant dense<0xFF800000> : vector<8xf32>
    %167 = vector.multi_reduction <maximumf>, %166, %cst_57 [1] : vector<8x8xf32> to vector<8xf32>
    %168 = vector.shape_cast %167 : vector<8xf32> to vector<8x1xf32>
    %169 = vector.broadcast %168 : vector<8x1xf32> to vector<8x8xf32>
    %170 = arith.subf %166, %169 : vector<8x8xf32>
    %171 = math.exp %170 : vector<8x8xf32>
    %cst_58 = arith.constant dense<0.000000e+00> : vector<8xf32>
    %172 = vector.multi_reduction <add>, %171, %cst_58 [1] : vector<8x8xf32> to vector<8xf32>
    %173 = vector.shape_cast %172 : vector<8xf32> to vector<8x1xf32>
    %174 = arith.truncf %171 : vector<8x8xf32> to vector<8x8xbf16>
    %cst_59 = arith.constant dense<0.000000e+00> : vector<8x8xf32>
    %175 = tpu.matmul %174, %164, %cst_59 {dimension_numbers = #tpu.dot_dimension_numbers<[1], [0], [0], [1], [0, 0, 1, 1], [], []>} : vector<8x8xbf16>, vector<8x8xbf16>, vector<8x8xf32> -> vector<8x8xf32>
    %176 = tpu.reciprocal %173 {approx = true} : vector<8x1xf32> -> vector<8x1xf32>
    %177 = vector.broadcast %176 : vector<8x1xf32> to vector<8x8xf32>
    %178 = arith.mulf %175, %177 : vector<8x8xf32>
    %c8_60 = arith.constant 8 : index
    %c24_61 = arith.constant 24 : index
    %179 = vector.load %arg16[%c8_60, %c24_61] : memref<16x32xf32, #tpu.memory_space<vmem>>, vector<8x8xf32>
    tpu.vector_store %arg16[%c8_60, %c24_61], %178 {strides = array<i32>} : memref<16x32xf32, #tpu.memory_space<vmem>>, vector<8x8xf32>,
    %c0_62 = arith.constant 0 : index
    %c0_63 = arith.constant 0 : index
    %180 = vector.load %arg16[%c0_62, %c0_63] : memref<16x32xf32, #tpu.memory_space<vmem>>, vector<16x32xf32>
    %181 = arith.truncf %180 : vector<16x32xf32> to vector<16x32xbf16>
    %c0_64 = arith.constant 0 : index
    %c0_65 = arith.constant 0 : index
    %182 = vector.load %arg7[%c0_64, %c0_65] : memref<32x32xbf16, #tpu.memory_space<vmem>>, vector<32x32xbf16>
    %cst_66 = arith.constant dense<0.000000e+00> : vector<16x32xf32>
    %183 = tpu.matmul %181, %182, %cst_66 {dimension_numbers = #tpu.dot_dimension_numbers<[1], [0], [0], [1], [0, 0, 1, 1], [], []>} : vector<16x32xbf16>, vector<32x32xbf16>, vector<16x32xf32> -> vector<16x32xf32>
    %c0_67 = arith.constant 0 : index
    %c0_68 = arith.constant 0 : index
    %184 = vector.load %arg8[%c0_67, %c0_68] : memref<1x32xf32, #tpu.memory_space<vmem>>, vector<1x32xf32>
    %185 = vector.broadcast %184 : vector<1x32xf32> to vector<16x32xf32>
    %186 = arith.addf %183, %185 : vector<16x32xf32>
    %187 = arith.addf %1, %186 : vector<16x32xf32>
    %c0_69 = arith.constant 0 : index
    %c0_70 = arith.constant 0 : index
    %188 = vector.load %arg9[%c0_69, %c0_70] : memref<1x32xf32, #tpu.memory_space<vmem>>, vector<1x32xf32>
    %c0_71 = arith.constant 0 : index
    %c0_72 = arith.constant 0 : index
    %189 = vector.load %arg10[%c0_71, %c0_72] : memref<1x32xf32, #tpu.memory_space<vmem>>, vector<1x32xf32>
    %cst_73 = arith.constant dense<0.000000e+00> : vector<16xf32>
    %190 = vector.multi_reduction <add>, %187, %cst_73 [1] : vector<16x32xf32> to vector<16xf32>
    %191 = vector.shape_cast %190 : vector<16xf32> to vector<16x1xf32>
    %cst_74 = arith.constant 3.200000e+01 : f32
    %192 = vector.broadcast %cst_74 : f32 to vector<16x1xf32>
    %193 = arith.divf %191, %192 : vector<16x1xf32>
    %194 = vector.broadcast %193 : vector<16x1xf32> to vector<16x32xf32>
    %195 = arith.subf %187, %194 : vector<16x32xf32>
    %196 = arith.mulf %195, %195 : vector<16x32xf32>
    %cst_75 = arith.constant dense<0.000000e+00> : vector<16xf32>
    %197 = vector.multi_reduction <add>, %196, %cst_75 [1] : vector<16x32xf32> to vector<16xf32>
    %198 = vector.shape_cast %197 : vector<16xf32> to vector<16x1xf32>
    %cst_76 = arith.constant 3.200000e+01 : f32
    %199 = vector.broadcast %cst_76 : f32 to vector<16x1xf32>
    %200 = arith.divf %198, %199 : vector<16x1xf32>
    %201 = vector.broadcast %193 : vector<16x1xf32> to vector<16x32xf32>
    %202 = arith.subf %187, %201 : vector<16x32xf32>
    %cst_77 = arith.constant 9.99999974E-6 : f32
    %203 = vector.broadcast %cst_77 : f32 to vector<16x1xf32>
    %204 = arith.addf %200, %203 : vector<16x1xf32>
    %205 = math.rsqrt %204 : vector<16x1xf32>
    %206 = vector.broadcast %205 : vector<16x1xf32> to vector<16x32xf32>
    %207 = arith.mulf %202, %206 : vector<16x32xf32>
    %208 = vector.broadcast %188 : vector<1x32xf32> to vector<16x32xf32>
    %209 = arith.mulf %207, %208 : vector<16x32xf32>
    %210 = vector.broadcast %189 : vector<1x32xf32> to vector<16x32xf32>
    %211 = arith.addf %209, %210 : vector<16x32xf32>
    %212 = arith.truncf %211 : vector<16x32xf32> to vector<16x32xbf16>
    %c0_78 = arith.constant 0 : index
    %c0_79 = arith.constant 0 : index
    %213 = vector.load %arg14[%c0_78, %c0_79] : memref<1x32xf32, #tpu.memory_space<vmem>>, vector<1x32xf32>
    %214 = vector.broadcast %213 : vector<1x32xf32> to vector<16x32xf32>
    %215 = arith.addf %187, %214 : vector<16x32xf32>
    %c0_80 = arith.constant 0 : index
    %c0_81 = arith.constant 0 : index
    %216 = vector.load %arg17[%c0_80, %c0_81] : memref<16x32xf32, #tpu.memory_space<vmem>>, vector<16x32xf32>
    tpu.vector_store %arg17[%c0_80, %c0_81], %215 {strides = array<i32>} : memref<16x32xf32, #tpu.memory_space<vmem>>, vector<16x32xf32>,
    %c0_i32 = arith.constant 0 : i32
    %217 = arith.index_cast %c0_i32 : i32 to index
    %c0_82 = arith.constant 0 : index
    %c0_83 = arith.constant 0 : index
    %218 = vector.load %arg11[%217, %c0_82, %c0_83] : memref<1x32x128xbf16, #tpu.memory_space<vmem>>, vector<1x32x128xbf16>
    %219 = vector.shape_cast %218 : vector<1x32x128xbf16> to vector<32x128xbf16>
    %cst_84 = arith.constant dense<0.000000e+00> : vector<16x128xf32>
    %220 = tpu.matmul %212, %219, %cst_84 {dimension_numbers = #tpu.dot_dimension_numbers<[1], [0], [0], [1], [0, 0, 1, 1], [], []>} : vector<16x32xbf16>, vector<32x128xbf16>, vector<16x128xf32> -> vector<16x128xf32>
    %221 = arith.index_cast %c0_i32 : i32 to index
    %c0_85 = arith.constant 0 : index
    %c0_86 = arith.constant 0 : index
    %222 = vector.load %arg12[%221, %c0_85, %c0_86] : memref<1x1x128xf32, #tpu.memory_space<vmem>>, vector<1x1x128xf32>
    %223 = vector.shape_cast %222 : vector<1x1x128xf32> to vector<1x128xf32>
    %224 = vector.broadcast %223 : vector<1x128xf32> to vector<16x128xf32>
    %225 = arith.addf %220, %224 : vector<16x128xf32>
    %cst_87 = arith.constant 5.000000e-01 : f32
    %226 = vector.broadcast %cst_87 : f32 to vector<16x128xf32>
    %227 = arith.mulf %226, %225 : vector<16x128xf32>
    %cst_88 = arith.constant 0.707106769 : f32
    %228 = vector.broadcast %cst_88 : f32 to vector<16x128xf32>
    %229 = arith.mulf %225, %228 : vector<16x128xf32>
    %230 = math.erf %229 : vector<16x128xf32>
    %cst_89 = arith.constant 1.000000e+00 : f32
    %231 = vector.broadcast %cst_89 : f32 to vector<16x128xf32>
    %232 = arith.addf %231, %230 : vector<16x128xf32>
    %233 = arith.mulf %227, %232 : vector<16x128xf32>
    %c0_90 = arith.constant 0 : index
    %c0_91 = arith.constant 0 : index
    %234 = vector.load %arg17[%c0_90, %c0_91] : memref<16x32xf32, #tpu.memory_space<vmem>>, vector<16x32xf32>
    %235 = arith.truncf %233 : vector<16x128xf32> to vector<16x128xbf16>
    %236 = arith.index_cast %c0_i32 : i32 to index
    %c0_92 = arith.constant 0 : index
    %c0_93 = arith.constant 0 : index
    %237 = vector.load %arg13[%236, %c0_92, %c0_93] : memref<1x128x32xbf16, #tpu.memory_space<vmem>>, vector<1x128x32xbf16>
    %238 = vector.shape_cast %237 : vector<1x128x32xbf16> to vector<128x32xbf16>
    %cst_94 = arith.constant dense<0.000000e+00> : vector<16x32xf32>
    %239 = tpu.matmul %235, %238, %cst_94 {dimension_numbers = #tpu.dot_dimension_numbers<[1], [0], [0], [1], [0, 0, 1, 1], [], []>} : vector<16x128xbf16>, vector<128x32xbf16>, vector<16x32xf32> -> vector<16x32xf32>
    %240 = arith.addf %234, %239 : vector<16x32xf32>
    %c0_95 = arith.constant 0 : index
    %c0_96 = arith.constant 0 : index
    %241 = vector.load %arg17[%c0_95, %c0_96] : memref<16x32xf32, #tpu.memory_space<vmem>>, vector<16x32xf32>
    tpu.vector_store %arg17[%c0_95, %c0_96], %240 {strides = array<i32>} : memref<16x32xf32, #tpu.memory_space<vmem>>, vector<16x32xf32>,
    %c1_i32 = arith.constant 1 : i32
    %c0_97 = arith.constant 0 : index
    %c0_98 = arith.constant 0 : index
    %242 = vector.load %arg17[%c0_97, %c0_98] : memref<16x32xf32, #tpu.memory_space<vmem>>, vector<16x32xf32>
    %243 = vector.shape_cast %242 : vector<16x32xf32> to vector<2x8x32xf32>
    %c0_99 = arith.constant 0 : index
    %c0_100 = arith.constant 0 : index
    %c0_101 = arith.constant 0 : index
    %244 = vector.load %arg15[%c0_99, %c0_100, %c0_101] : memref<2x8x32xf32, #tpu.memory_space<vmem>>, vector<2x8x32xf32>
    tpu.vector_store %arg15[%c0_99, %c0_100, %c0_101], %243 {strides = array<i32>} : memref<2x8x32xf32, #tpu.memory_space<vmem>>, vector<2x8x32xf32>,
    return
  }
  func.func @transform_0(%arg0: i32) -> (i32, i32, i32) {
    %c0_i32 = arith.constant 0 : i32
    %c0_i32_0 = arith.constant 0 : i32
    %c0_i32_1 = arith.constant 0 : i32
    return %arg0, %c0_i32, %c0_i32_0 : i32, i32, i32
  }
  func.func @transform_1(%arg0: i32) -> (i32, i32) {
    %c0_i32 = arith.constant 0 : i32
    %c0_i32_0 = arith.constant 0 : i32
    %c0_i32_1 = arith.constant 0 : i32
    return %c0_i32, %c0_i32_0 : i32, i32
  }
  func.func @transform_2(%arg0: i32) -> (i32, i32) {
    %c0_i32 = arith.constant 0 : i32
    %c0_i32_0 = arith.constant 0 : i32
    %c0_i32_1 = arith.constant 0 : i32
    return %c0_i32, %c0_i32_0 : i32, i32
  }
  func.func @transform_3(%arg0: i32) -> (i32, i32) {
    %c0_i32 = arith.constant 0 : i32
    %c0_i32_0 = arith.constant 0 : i32
    %c0_i32_1 = arith.constant 0 : i32
    return %c0_i32, %c0_i32_0 : i32, i32
  }
  func.func @transform_4(%arg0: i32) -> (i32, i32) {
    %c0_i32 = arith.constant 0 : i32
    %c0_i32_0 = arith.constant 0 : i32
    %c0_i32_1 = arith.constant 0 : i32
    return %c0_i32, %c0_i32_0 : i32, i32
  }
  func.func @transform_5(%arg0: i32) -> (i32, i32) {
    %c0_i32 = arith.constant 0 : i32
    %c0_i32_0 = arith.constant 0 : i32
    %c0_i32_1 = arith.constant 0 : i32
    return %c0_i32, %c0_i32_0 : i32, i32
  }
  func.func @transform_6(%arg0: i32) -> (i32, i32) {
    %c0_i32 = arith.constant 0 : i32
    %c0_i32_0 = arith.constant 0 : i32
    %c0_i32_1 = arith.constant 0 : i32
    return %c0_i32, %c0_i32_0 : i32, i32
  }
  func.func @transform_7(%arg0: i32) -> (i32, i32) {
    %c0_i32 = arith.constant 0 : i32
    %c0_i32_0 = arith.constant 0 : i32
    %c0_i32_1 = arith.constant 0 : i32
    return %c0_i32, %c0_i32_0 : i32, i32
  }
  func.func @transform_8(%arg0: i32) -> (i32, i32) {
    %c0_i32 = arith.constant 0 : i32
    %c0_i32_0 = arith.constant 0 : i32
    %c0_i32_1 = arith.constant 0 : i32
    return %c0_i32, %c0_i32_0 : i32, i32
  }
  func.func @transform_9(%arg0: i32) -> (i32, i32) {
    %c0_i32 = arith.constant 0 : i32
    %c0_i32_0 = arith.constant 0 : i32
    %c0_i32_1 = arith.constant 0 : i32
    return %c0_i32, %c0_i32_0 : i32, i32
  }
  func.func @transform_10(%arg0: i32) -> (i32, i32, i32) {
    %c0_i32 = arith.constant 0 : i32
    %c0_i32_0 = arith.constant 0 : i32
    %c0_i32_1 = arith.constant 0 : i32
    %c0_i32_2 = arith.constant 0 : i32
    return %c0_i32, %c0_i32_0, %c0_i32_1 : i32, i32, i32
  }
  func.func @transform_11(%arg0: i32) -> (i32, i32, i32) {
    %c0_i32 = arith.constant 0 : i32
    %c0_i32_0 = arith.constant 0 : i32
    %c0_i32_1 = arith.constant 0 : i32
    %c0_i32_2 = arith.constant 0 : i32
    return %c0_i32, %c0_i32_0, %c0_i32_1 : i32, i32, i32
  }
  func.func @transform_12(%arg0: i32) -> (i32, i32, i32) {
    %c0_i32 = arith.constant 0 : i32
    %c0_i32_0 = arith.constant 0 : i32
    %c0_i32_1 = arith.constant 0 : i32
    %c0_i32_2 = arith.constant 0 : i32
    return %c0_i32, %c0_i32_0, %c0_i32_1 : i32, i32, i32
  }
  func.func @transform_13(%arg0: i32) -> (i32, i32) {
    %c0_i32 = arith.constant 0 : i32
    %c0_i32_0 = arith.constant 0 : i32
    %c0_i32_1 = arith.constant 0 : i32
    return %c0_i32, %c0_i32_0 : i32, i32
  }
  func.func @transform_14(%arg0: i32) -> (i32, i32, i32) {
    %c0_i32 = arith.constant 0 : i32
    %c0_i32_0 = arith.constant 0 : i32
    %c0_i32_1 = arith.constant 0 : i32
    return %arg0, %c0_i32, %c0_i32_0 : i32, i32, i32
  }
}

</mosaic_0001>

<bundles_post_ra>
// kernel: tpu_custom_call.1
= control target key start
LH: loop header
LB: loop body
LE: loop exit
PB: predicated region body
PF: predicated region fallthrough
CT: control target
= control target key end

     0   :  { %19 = vsyncpa [#allocation5], 0  ;;  %s2796_s0 = inlined_call_operand.hbm [shape: f32[2,8,32], index: 0, kind: input, shape index: {}]   ;;  %s2797_s1 = inlined_call_operand.hbm [shape: f32[8,8], index: 1, kind: input, shape index: {}]   ;;  %s2798_s2 = inlined_call_operand.hbm [shape: f32[1,32], index: 2, kind: input, shape index: {}]   ;;  %s2799_s3 = inlined_call_operand.hbm [shape: f32[1,32], index: 3, kind: input, shape index: {}]   ;;  %s2800_s4 = inlined_call_operand.hbm [shape: bf16[32,96], index: 4, kind: input, shape index: {}]   ;;  %s2801_s5 = inlined_call_operand.hbm [shape: f32[1,96], index: 5, kind: input, shape index: {}]   ;;  %s2802_s6 = inlined_call_operand.hbm [shape: bf16[32,32], index: 6, kind: input, shape index: {}]   ;;  %s2803_s7 = inlined_call_operand.hbm [shape: f32[1,32], index: 7, kind: input, shape index: {}]   ;;  %s2804_s8 = inlined_call_operand.hbm [shape: f32[1,32], index: 8, kind: input, shape index: {}]   ;;  %s2805_s9 = inlined_call_operand.hbm [shape: f32[1,32], index: 9, kind: input, shape index: {}]   ;;  %s2806_s10 = inlined_call_operand.hbm [shape: bf16[1,32,128], index: 10, kind: input, shape index: {}]   ;;  %s2807_s11 = inlined_call_operand.hbm [shape: f32[1,1,128], index: 11, kind: input, shape index: {}]   ;;  %s2808_s12 = inlined_call_operand.hbm [shape: bf16[1,128,32], index: 12, kind: input, shape index: {}]   ;;  %s2809_s13 = inlined_call_operand.hbm [shape: f32[1,32], index: 13, kind: input, shape index: {}]   ;;  %s2810_s14 = inlined_call_operand.hbm [shape: f32[2,8,32], index: 14, kind: output, shape index: {}]  }
   0x1   :  { %20 = vsyncpa [#allocation8], 0 }
   0x2   :  { %21 = vsyncpa [#allocation11], 0 }
   0x3   :  { %22 = vsyncpa [#allocation14], 0 }
   0x4   :  { %23 = vsyncpa [#allocation17], 0 }
   0x5   :  { %24 = vsyncpa [#allocation20], 0 }
   0x6   :  { %25 = vsyncpa [#allocation23], 0 }
   0x7   :  { %26 = vsyncpa [#allocation26], 0 }
   0x8   :  { %27 = vsyncpa [#allocation6], 0  ;;  %s2269_s29 = smov [#allocation7]   ;;  %s2270_s15 = smov [#allocation10]  }
   0x9   :  { %s46_s30 = sshll.u32 %s2269_s29, 4  ;;  %s66_s16 = sshll.u32 %s2270_s15, 4  ;;  %s47_s30 = int_to_ptr.vmem [resolvable:$true] %s46_s30  ;;  %s67_s16 = int_to_ptr.vmem [resolvable:$true] %s66_s16 }
   0xa   :  { %s1921_s19 = scalar_lea.hbm %s2797_s1, 128 }
   0xb   :  { %p1922_p0 = scmp.ne.s32.totalorder %s2797_s1, %s1921_s19  ;;  %p1925_p1 = scmp.lt.u32.totalorder %s1921_s19, %s2797_s1 }
   0xd   :  { %p1927_p2 = pnand %p1925_p1, %p1922_p0 }
   0xf   :  { %1930 = shalt.err (!%p1927_p2)
}
  0x10   :  { %s1931_s24 = scalar_lea.vmem %s47_s30, 128  ;;  %p1936_p4 = scmp.lt.s32.totalorder %s47_s30, %s47_s30 }
  0x11   :  { %p1932_p3 = scmp.ne.s32.totalorder %s47_s30, %s1931_s24  ;;  %p1937_p5 = scmp.lt.s32.totalorder %s1931_s24, %s1931_s24 }
  0x13   :  { %p1938_p6 = por %p1937_p5, %p1936_p4 }
  0x15   :  { %p1939_p7 = pnand %p1938_p6, %p1932_p3 }
  0x17   :  { %1942 = shalt.err (!%p1939_p7)
}
  0x18   :  { %49 = dma.hbm_to_vmem [thread:$0]  %s2797_s1, 128, %s47_s30, [#allocation8]  }
  0x19   :  { %s1943_s29 = scalar_lea.hbm %s2799_s3, 16 }
  0x1a   :  { %p1944_p8 = scmp.ne.s32.totalorder %s2799_s3, %s1943_s29  ;;  %p1947_p9 = scmp.lt.u32.totalorder %s1943_s29, %s2799_s3 }
  0x1c   :  { %p1949_p10 = pnand %p1947_p9, %p1944_p8 }
  0x1e   :  { %1952 = shalt.err (!%p1949_p10)
}
  0x1f   :  { %s1953_s20 = scalar_lea.vmem %s67_s16, 16  ;;  %s1957_s21 = scalar_lea.vmem %s67_s16, 32 }
  0x20   :  { %p1954_p11 = scmp.ne.s32.totalorder %s67_s16, %s1953_s20  ;;  %p1958_p12 = scmp.lt.s32.totalorder %s67_s16, %s67_s16 }
  0x21   :  { %p1959_p13 = scmp.lt.s32.totalorder %s1957_s21, %s1953_s20 }
  0x23   :  { %p1960_p0 = por %p1959_p13, %p1958_p12 }
  0x25   :  { %p1961_p1 = pnand %p1960_p0, %p1954_p11 }
  0x27   :  { %1964 = shalt.err (!%p1961_p1)
}
  0x28   :  { %69 = dma.hbm_to_vmem [thread:$0]  %s2799_s3, 16, %s67_s16, [#allocation11]  }
  0x29   :  { %s2271_s22 = smov [#allocation13]   ;;  %s2272_s24 = smov [#allocation16]  }
  0x2a   :  { %s88_s23 = sshll.u32 %s2271_s22, 4  ;;  %s110_s25 = sshll.u32 %s2272_s24, 4  ;;  %s89_s23 = int_to_ptr.vmem [resolvable:$true] %s88_s23  ;;  %s111_s25 = int_to_ptr.vmem [resolvable:$true] %s110_s25 }
  0x2b   :  { %s1965_s28 = scalar_lea.hbm %s2801_s5, 16 }
  0x2c   :  { %p1966_p2 = scmp.ne.s32.totalorder %s2801_s5, %s1965_s28  ;;  %p1969_p3 = scmp.lt.u32.totalorder %s1965_s28, %s2801_s5 }
  0x2e   :  { %p1971_p4 = pnand %p1969_p3, %p1966_p2 }
  0x30   :  { %1974 = shalt.err (!%p1971_p4)
}
  0x31   :  { %s1975_s3 = scalar_lea.vmem %s89_s23, 16  ;;  %s1979_s16 = scalar_lea.vmem %s89_s23, 32 }
  0x32   :  { %p1976_p5 = scmp.ne.s32.totalorder %s89_s23, %s1975_s3  ;;  %p1980_p6 = scmp.lt.s32.totalorder %s89_s23, %s89_s23 }
  0x33   :  { %p1981_p7 = scmp.lt.s32.totalorder %s1979_s16, %s1975_s3 }
  0x35   :  { %p1982_p8 = por %p1981_p7, %p1980_p6 }
  0x37   :  { %p1983_p9 = pnand %p1982_p8, %p1976_p5 }
  0x39   :  { %1986 = shalt.err (!%p1983_p9)
}
  0x3a   :  { %91 = dma.hbm_to_vmem [thread:$0]  %s2801_s5, 16, %s89_s23, [#allocation14]  }
  0x3b   :  { %s1987_s30 = scalar_lea.hbm %s2803_s7, 16 }
  0x3c   :  { %p1988_p10 = scmp.ne.s32.totalorder %s2803_s7, %s1987_s30  ;;  %p1991_p11 = scmp.lt.u32.totalorder %s1987_s30, %s2803_s7 }
  0x3e   :  { %p1993_p12 = pnand %p1991_p11, %p1988_p10 }
  0x40   :  { %1996 = shalt.err (!%p1993_p12)
}
  0x41   :  { %s1997_s28 = scalar_lea.vmem %s111_s25, 16  ;;  %s2001_s29 = scalar_lea.vmem %s111_s25, 32 }
  0x42   :  { %p1998_p13 = scmp.ne.s32.totalorder %s111_s25, %s1997_s28  ;;  %p2002_p0 = scmp.lt.s32.totalorder %s111_s25, %s111_s25 }
  0x43   :  { %p2003_p1 = scmp.lt.s32.totalorder %s2001_s29, %s1997_s28 }
  0x45   :  { %p2004_p2 = por %p2003_p1, %p2002_p0 }
  0x47   :  { %p2005_p3 = pnand %p2004_p2, %p1998_p13 }
  0x49   :  { %2008 = shalt.err (!%p2005_p3)
}
  0x4a   :  { %113 = dma.hbm_to_vmem [thread:$0]  %s2803_s7, 16, %s111_s25, [#allocation17]  }
  0x4b   :  { %s2273_s15 = smov [#allocation19]   ;;  %s2274_s18 = smov [#allocation22]  }
  0x4c   :  { %s130_s17 = sshll.u32 %s2273_s15, 4  ;;  %s152_s3 = sshll.u32 %s2274_s18, 4  ;;  %s131_s17 = int_to_ptr.vmem [resolvable:$true] %s130_s17  ;;  %s153_s3 = int_to_ptr.vmem [resolvable:$true] %s152_s3 }
  0x4d   :  { %s2009_s20 = scalar_lea.hbm %s2805_s9, 16 }
  0x4e   :  { %p2010_p4 = scmp.ne.s32.totalorder %s2805_s9, %s2009_s20  ;;  %p2013_p5 = scmp.lt.u32.totalorder %s2009_s20, %s2805_s9 }
  0x50   :  { %p2015_p6 = pnand %p2013_p5, %p2010_p4 }
  0x52   :  { %2018 = shalt.err (!%p2015_p6)
}
  0x53   :  { %s2019_s7 = scalar_lea.vmem %s131_s17, 16  ;;  %s2023_s25 = scalar_lea.vmem %s131_s17, 32 }
  0x54   :  { %p2020_p7 = scmp.ne.s32.totalorder %s131_s17, %s2019_s7  ;;  %p2024_p8 = scmp.lt.s32.totalorder %s131_s17, %s131_s17 }
  0x55   :  { %p2025_p9 = scmp.lt.s32.totalorder %s2023_s25, %s2019_s7 }
  0x57   :  { %p2026_p10 = por %p2025_p9, %p2024_p8 }
  0x59   :  { %p2027_p11 = pnand %p2026_p10, %p2020_p7 }
  0x5b   :  { %2030 = shalt.err (!%p2027_p11)
}
  0x5c   :  { %133 = dma.hbm_to_vmem [thread:$0]  %s2805_s9, 16, %s131_s17, [#allocation20]  }
  0x5d   :  { %s2031_s29 = scalar_lea.hbm %s2807_s11, 16 }
  0x5e   :  { %p2032_p12 = scmp.ne.s32.totalorder %s2807_s11, %s2031_s29  ;;  %p2035_p13 = scmp.lt.u32.totalorder %s2031_s29, %s2807_s11 }
  0x60   :  { %p2037_p0 = pnand %p2035_p13, %p2032_p12 }
  0x62   :  { %2040 = shalt.err (!%p2037_p0)
}
  0x63   :  { %s2041_s16 = scalar_lea.vmem %s153_s3, 16  ;;  %s2045_s19 = scalar_lea.vmem %s153_s3, 32 }
  0x64   :  { %p2042_p1 = scmp.ne.s32.totalorder %s153_s3, %s2041_s16  ;;  %p2046_p2 = scmp.lt.s32.totalorder %s153_s3, %s153_s3 }
  0x65   :  { %p2047_p3 = scmp.lt.s32.totalorder %s2045_s19, %s2041_s16 }
  0x67   :  { %p2048_p4 = por %p2047_p3, %p2046_p2 }
  0x69   :  { %p2049_p5 = pnand %p2048_p4, %p2042_p1 }
  0x6b   :  { %2052 = shalt.err (!%p2049_p5)
}
  0x6c   :  { %155 = dma.hbm_to_vmem [thread:$0]  %s2807_s11, 16, %s153_s3, [#allocation23]  }
  0x6d   :  { %s2275_s20 = smov [#allocation4]   ;;  %s2053_s22 = scalar_lea.hbm %s2796_s0, 256 }
  0x6e   :  { %s33_s21 = sshll.u32 %s2275_s20, 4  ;;  %p2054_p6 = scmp.ne.s32.totalorder %s2796_s0, %s2053_s22  ;;  %s34_s21 = int_to_ptr.vmem [resolvable:$true] %s33_s21 }
  0x6f   :  { %p2057_p7 = scmp.lt.u32.totalorder %s2053_s22, %s2796_s0 }
  0x71   :  { %p2059_p8 = pnand %p2057_p7, %p2054_p6 }
  0x73   :  { %2062 = shalt.err (!%p2059_p8)
}
  0x74   :  { %s2063_s27 = scalar_lea.vmem %s34_s21, 256  ;;  %p2068_p10 = scmp.lt.s32.totalorder %s34_s21, %s34_s21 }
  0x75   :  { %p2064_p9 = scmp.ne.s32.totalorder %s34_s21, %s2063_s27  ;;  %p2069_p11 = scmp.lt.s32.totalorder %s2063_s27, %s2063_s27 }
  0x77   :  { %p2070_p12 = por %p2069_p11, %p2068_p10 }
  0x79   :  { %p2071_p13 = pnand %p2070_p12, %p2064_p9 }
  0x7b   :  { %2074 = shalt.err (!%p2071_p13)
}
  0x7c   :  { %s2276_s11 = smov 128   ;;  %s2277_s3 = smov 8  }
  0x7d   :  { %39 = dma.hbm_to_vmem [thread:$0]  %s2796_s0, 256, %s34_s21, [#allocation5], %s2276_s11, %s2276_s11, %s2277_s3  }
  0x7e   :  { %s2278_s5 = smov [#allocation9]   ;;  %s2279_s15 = smov [#allocation12]  }
  0x7f   :  { %s56_s23 = sshll.u32 %s2278_s5, 4  ;;  %s75_s18 = sshll.u32 %s2279_s15, 4  ;;  %s57_s23 = int_to_ptr.vmem [resolvable:$true] %s56_s23  ;;  %s76_s18 = int_to_ptr.vmem [resolvable:$true] %s75_s18 }
  0x80   :  { %s2075_s9 = scalar_lea.hbm %s2798_s2, 16 }
  0x81   :  { %p2076_p0 = scmp.ne.s32.totalorder %s2798_s2, %s2075_s9  ;;  %p2079_p1 = scmp.lt.u32.totalorder %s2075_s9, %s2798_s2 }
  0x83   :  { %p2081_p2 = pnand %p2079_p1, %p2076_p0 }
  0x85   :  { %2084 = shalt.err (!%p2081_p2)
}
  0x86   :  { %s2085_s0 = scalar_lea.vmem %s57_s23, 16  ;;  %s2089_s21 = scalar_lea.vmem %s57_s23, 32 }
  0x87   :  { %p2086_p3 = scmp.ne.s32.totalorder %s57_s23, %s2085_s0  ;;  %p2090_p4 = scmp.lt.s32.totalorder %s57_s23, %s57_s23 }
  0x88   :  { %p2091_p5 = scmp.lt.s32.totalorder %s2089_s21, %s2085_s0 }
  0x8a   :  { %p2092_p6 = por %p2091_p5, %p2090_p4 }
  0x8c   :  { %p2093_p7 = pnand %p2092_p6, %p2086_p3 }
  0x8e   :  { %2096 = shalt.err (!%p2093_p7)
}
  0x8f   :  { %59 = dma.hbm_to_vmem [thread:$0]  %s2798_s2, 16, %s57_s23, [#allocation8]  }
  0x90   :  { %s2097_s26 = scalar_lea.hbm %s2800_s4, 256 }
  0x91   :  { %p2098_p8 = scmp.ne.s32.totalorder %s2800_s4, %s2097_s26  ;;  %p2101_p9 = scmp.lt.u32.totalorder %s2097_s26, %s2800_s4 }
  0x93   :  { %p2103_p10 = pnand %p2101_p9, %p2098_p8 }
  0x95   :  { %2106 = shalt.err (!%p2103_p10)
}
  0x96   :  { %s2107_s15 = scalar_lea.vmem %s76_s18, 256  ;;  %p2112_p12 = scmp.lt.s32.totalorder %s76_s18, %s76_s18 }
  0x97   :  { %p2108_p11 = scmp.ne.s32.totalorder %s76_s18, %s2107_s15  ;;  %p2113_p13 = scmp.lt.s32.totalorder %s2107_s15, %s2107_s15 }
  0x99   :  { %p2114_p0 = por %p2113_p13, %p2112_p12 }
  0x9b   :  { %p2115_p1 = pnand %p2114_p0, %p2108_p11 }
  0x9d   :  { %2118 = shalt.err (!%p2115_p1)
}
  0x9e   :  { %s2280_s2 = smov 64   ;;  %s2281_s23 = smov 4  }
  0x9f   :  { %81 = dma.hbm_to_vmem [thread:$0]  %s2800_s4, 256, %s76_s18, [#allocation11], %s2280_s2, %s2280_s2, %s2281_s23  }
  0xa0   :  { %s2282_s9 = smov [#allocation15]   ;;  %s2283_s20 = smov [#allocation18]  }
  0xa1   :  { %s97_s17 = sshll.u32 %s2282_s9, 4  ;;  %s120_s1 = sshll.u32 %s2283_s20, 4  ;;  %s98_s17 = int_to_ptr.vmem [resolvable:$true] %s97_s17  ;;  %s121_s1 = int_to_ptr.vmem [resolvable:$true] %s120_s1 }
  0xa2   :  { %s2119_s21 = scalar_lea.hbm %s2802_s6, 256 }
  0xa3   :  { %p2120_p2 = scmp.ne.s32.totalorder %s2802_s6, %s2119_s21  ;;  %p2123_p3 = scmp.lt.u32.totalorder %s2119_s21, %s2802_s6 }
  0xa5   :  { %p2125_p4 = pnand %p2123_p3, %p2120_p2 }
  0xa7   :  { %2128 = shalt.err (!%p2125_p4)
}
  0xa8   :  { %s2129_s4 = scalar_lea.vmem %s98_s17, 256  ;;  %p2134_p6 = scmp.lt.s32.totalorder %s98_s17, %s98_s17 }
  0xa9   :  { %p2130_p5 = scmp.ne.s32.totalorder %s98_s17, %s2129_s4  ;;  %p2135_p7 = scmp.lt.s32.totalorder %s2129_s4, %s2129_s4 }
  0xab   :  { %p2136_p8 = por %p2135_p7, %p2134_p6 }
  0xad   :  { %p2137_p9 = pnand %p2136_p8, %p2130_p5 }
  0xaf   :  { %2140 = shalt.err (!%p2137_p9)
}
  0xb0   :  { %103 = dma.hbm_to_vmem [thread:$0]  %s2802_s6, 256, %s98_s17, [#allocation14], %s2280_s2, %s2280_s2, %s2281_s23  }
  0xb1   :  { %s2141_s29 = scalar_lea.hbm %s2804_s8, 16 }
  0xb2   :  { %p2142_p10 = scmp.ne.s32.totalorder %s2804_s8, %s2141_s29  ;;  %p2145_p11 = scmp.lt.u32.totalorder %s2141_s29, %s2804_s8 }
  0xb4   :  { %p2147_p12 = pnand %p2145_p11, %p2142_p10 }
  0xb6   :  { %2150 = shalt.err (!%p2147_p12)
}
  0xb7   :  { %s2151_s9 = scalar_lea.vmem %s121_s1, 16  ;;  %s2155_s20 = scalar_lea.vmem %s121_s1, 32 }
  0xb8   :  { %p2152_p13 = scmp.ne.s32.totalorder %s121_s1, %s2151_s9  ;;  %p2156_p0 = scmp.lt.s32.totalorder %s121_s1, %s121_s1 }
  0xb9   :  { %p2157_p1 = scmp.lt.s32.totalorder %s2155_s20, %s2151_s9 }
  0xbb   :  { %p2158_p2 = por %p2157_p1, %p2156_p0 }
  0xbd   :  { %p2159_p3 = pnand %p2158_p2, %p2152_p13 }
  0xbf   :  { %2162 = shalt.err (!%p2159_p3)
}
  0xc0   :  { %123 = dma.hbm_to_vmem [thread:$0]  %s2804_s8, 16, %s121_s1, [#allocation17]  }
  0xc1   :  { %s2284_s30 = smov [#allocation21]   ;;  %s2285_s21 = smov [#allocation24]  }
  0xc2   :  { %s139_s0 = sshll.u32 %s2284_s30, 4  ;;  %s161_s22 = sshll.u32 %s2285_s21, 4  ;;  %s140_s0 = int_to_ptr.vmem [resolvable:$true] %s139_s0  ;;  %s162_s22 = int_to_ptr.vmem [resolvable:$true] %s161_s22 }
  0xc3   :  { %s2163_s24 = scalar_lea.hbm %s2806_s10, 256 }
  0xc4   :  { %p2164_p4 = scmp.ne.s32.totalorder %s2806_s10, %s2163_s24  ;;  %p2167_p5 = scmp.lt.u32.totalorder %s2163_s24, %s2806_s10 }
  0xc6   :  { %p2169_p6 = pnand %p2167_p5, %p2164_p4 }
  0xc8   :  { %2172 = shalt.err (!%p2169_p6)
}
  0xc9   :  { %s2173_s8 = scalar_lea.vmem %s140_s0, 256  ;;  %p2178_p8 = scmp.lt.s32.totalorder %s140_s0, %s140_s0 }
  0xca   :  { %p2174_p7 = scmp.ne.s32.totalorder %s140_s0, %s2173_s8  ;;  %p2179_p9 = scmp.lt.s32.totalorder %s2173_s8, %s2173_s8 }
  0xcc   :  { %p2180_p10 = por %p2179_p9, %p2178_p8 }
  0xce   :  { %p2181_p11 = pnand %p2180_p10, %p2174_p7 }
  0xd0   :  { %2184 = shalt.err (!%p2181_p11)
}
  0xd1   :  { %145 = dma.hbm_to_vmem [thread:$0]  %s2806_s10, 256, %s140_s0, [#allocation20], %s2280_s2, %s2280_s2, %s2281_s23  }
  0xd2   :  { %s2185_s15 = scalar_lea.hbm %s2808_s12, 1024 }
  0xd3   :  { %p2186_p12 = scmp.ne.s32.totalorder %s2808_s12, %s2185_s15  ;;  %p2189_p13 = scmp.lt.u32.totalorder %s2185_s15, %s2808_s12 }
  0xd5   :  { %p2191_p0 = pnand %p2189_p13, %p2186_p12 }
  0xd7   :  { %2194 = shalt.err (!%p2191_p0)
}
  0xd8   :  { %s2195_s6 = scalar_lea.vmem %s162_s22, 1024  ;;  %p2200_p2 = scmp.lt.s32.totalorder %s162_s22, %s162_s22 }
  0xd9   :  { %p2196_p1 = scmp.ne.s32.totalorder %s162_s22, %s2195_s6  ;;  %p2201_p3 = scmp.lt.s32.totalorder %s2195_s6, %s2195_s6 }
  0xdb   :  { %p2202_p4 = por %p2201_p3, %p2200_p2 }
  0xdd   :  { %p2203_p5 = pnand %p2202_p4, %p2196_p1 }
  0xdf   :  { %2206 = shalt.err (!%p2203_p5)
}
  0xe0   :  { %167 = dma.hbm_to_vmem [thread:$0]  %s2808_s12, 1024, %s162_s22, [#allocation23], %s2280_s2, %s2280_s2, %s2281_s23  }
  0xe1   :  { %s2286_s30 = smov [#allocation25]   ;;  %s2207_s25 = scalar_lea.hbm %s2809_s13, 16 }
  0xe2   :  { %s174_s0 = sshll.u32 %s2286_s30, 4  ;;  %p2208_p6 = scmp.ne.s32.totalorder %s2809_s13, %s2207_s25  ;;  %s175_s0 = int_to_ptr.vmem [resolvable:$true] %s174_s0 }
  0xe3   :  { %p2211_p7 = scmp.lt.u32.totalorder %s2207_s25, %s2809_s13 }
  0xe5   :  { %p2213_p8 = pnand %p2211_p7, %p2208_p6 }
  0xe7   :  { %2216 = shalt.err (!%p2213_p8)
}
  0xe8   :  { %s2217_s27 = scalar_lea.vmem %s175_s0, 16  ;;  %s2221_s12 = scalar_lea.vmem %s175_s0, 32 }
  0xe9   :  { %p2218_p9 = scmp.ne.s32.totalorder %s175_s0, %s2217_s27  ;;  %p2222_p10 = scmp.lt.s32.totalorder %s175_s0, %s175_s0 }
  0xea   :  { %p2223_p11 = scmp.lt.s32.totalorder %s2221_s12, %s2217_s27 }
  0xec   :  { %p2224_p12 = por %p2223_p11, %p2222_p10 }
  0xee   :  { %p2225_p13 = pnand %p2224_p12, %p2218_p9 }
  0xf0   :  { %2228 = shalt.err (!%p2225_p13)
}
  0xf1   :  { %177 = dma.hbm_to_vmem [thread:$0]  %s2809_s13, 16, %s175_s0, [#allocation26]  }
  0xf2   :  { %2251 = dma.done.wait [#allocation5], 256  }
  0xf3   :  { %2252 = vsyncadd [#allocation5], 4294967040 }
  0xf4   :  { %2253 = dma.done.wait [#allocation8], 144  }
  0xf5   :  { %2254 = vsyncadd [#allocation8], 4294967152 }
  0xf6   :  { %2255 = dma.done.wait [#allocation11], 272  }
  0xf7   :  { %2256 = vsyncadd [#allocation11], 4294967024 }
  0xf8   :  { %2257 = dma.done.wait [#allocation14], 272  }
  0xf9   :  { %2258 = vsyncadd [#allocation14], 4294967024 }
  0xfa   :  { %2259 = dma.done.wait [#allocation17], 32  }
  0xfb   :  { %2260 = vsyncadd [#allocation17], 4294967264 }
  0xfc   :  { %2261 = dma.done.wait [#allocation20], 272  }
  0xfd   :  { %2262 = vsyncadd [#allocation20], 4294967024 }
  0xfe   :  { %2263 = dma.done.wait [#allocation23], 1040  }
  0xff   :  { %2264 = vsyncadd [#allocation23], 4294966256 }
 0x100   :  { %2265 = dma.done.wait [#allocation26], 16  }
 0x101   :  { %2266 = vsyncadd [#allocation26], 4294967280  ;;  %vm225_vm0 = vcmask 261120   ;;  %v2560_v0 = vld [vmem:[#allocation4] sm:$0xff]  ;;  %v2562_v1 = vld [vmem:[#allocation4 + $0x8] sm:$0xff]  ;;  %v2287_v15 = vmov 0.0  }
 0x102   :  { %v226_v2 = vsel %vm225_vm0, %v2560_v0, 0.0  ;;  %v229_v3 = vsel %vm225_vm0, %v2562_v1, 0.0  ;;  %v1863_v14 = vld [vmem:[#allocation12] sm:$0xff]   ;;  %1690 = vmatprep.subr.bf16.mxu0 %v2287_v15  ;;  %1710 = vmatprep.subr.bf16.mxu1 %v2287_v15  ;;  %v1864_v16 = vld [vmem:[#allocation12 + $0x8] sm:$0xff]   ;;  %vm2288_vm1 = vmmov 0   ;;  %s2289_s13 = smov 88  }
 0x103   :  { %227 = vadd.xlane.f32.xlu0 %v226_v2  ;;  %1691 = vmatpush3.bf16.msra.mxu0 %v1863_v14  ;;  %v1599_v25 = vld [vmem:[#allocation9] ss:$0 sm:$0xff]  ;;  %v1600_v29 = vld [vmem:[#allocation10] ss:$0 sm:$0xff]  ;;  %v1601_v34 = vld [vmem:[#allocation13] ss:$0 sm:$0xff] }
 0x104   :  { %1694 = vmatprep.mubr.msk.bf16.mxu0 %vm2288_vm1, %v2287_v15  ;;  %1692 = vmatprep.subr.bf16.mxu0 %v2287_v15  ;;  %s2290_s8 = smov 96   ;;  %s2291_s1 = smov 120   ;;  %vm342_vm2 = vcmask 64512   ;;  %vm404_vm3 = vcmask 1043456   ;;  %vm565_vm4 = vcmask 130112   ;;  %vm681_vm5 = vcmask 195712  }
 0x105   :  { %1712 = vmatprep.mubr.msk.bf16.mxu1 %vm2288_vm1, %v2287_v15  ;;  %s2292_s28 = smov 112   ;;  %s2293_s29 = smov 80   ;;  %vm797_vm6 = vcmask 261312  }
 0x106   :  { %s2294_s5 = smov 104   ;;  %s2295_s15 = smov 72  }
 0x107   :  { %230 = vadd.xlane.f32.xlu0 %v229_v3  ;;  %1693 = vmatpush3.bf16.msra.mxu0 %v1864_v16  ;;  %s2296_s16 = smov 48   ;;  %s2297_s19 = smov 56  }
 0x108   :  { %1698 = vmatprep.subr.bf16.mxu0 %v2287_v15  ;;  %s2298_s9 = smov 40   ;;  %s2300_s20 = smov 24  }
 0x109   :  { %s2301_s6 = smov [#allocation27]  }
 0x10a   :  { %s1580_s10 = sshll.u32 %s2301_s6, 4  ;;  %s1581_s10 = int_to_ptr.vmem [resolvable:$true] %s1580_s10 }
 0x10b   :  { %s2229_s17 = scalar_lea.vmem %s1581_s10, 256  ;;  %p2234_p1 = scmp.lt.s32.totalorder %s1581_s10, %s1581_s10 }
 0x10c   :  { %p2230_p0 = scmp.ne.s32.totalorder %s1581_s10, %s2229_s17  ;;  %p2235_p2 = scmp.lt.s32.totalorder %s2229_s17, %s2229_s17 }
 0x10e   :  { %p2236_p3 = por %p2235_p2, %p2234_p1 }
 0x110   :  { %p2237_p4 = pnand %p2236_p3, %p2230_p0 }
 0x190   :  { %v228_v4 = vpop.xlane.xlu0 %227 }
 0x191   :  { %v233_v5 = vmul.f32 0.03125, %v228_v4 }
 0x193   :  { %v235_v6 = vsub.f32 %v2560_v0, %v233_v5  ;;  %v338_v5 = vld [vmem:[#allocation7] sm:$0xff] }
 0x194   :  { %v231_v7 = vpop.xlane.xlu0 %230 }
 0x195   :  { %v234_v8 = vmul.f32 0.03125, %v231_v7  ;;  %v237_v9 = vmul.f32 %v235_v6, %v235_v6 }
 0x197   :  { %v236_v10 = vsub.f32 %v2562_v1, %v234_v8  ;;  %v239_v11 = vsel %vm225_vm0, %v237_v9, 0.0 }
 0x198   :  { %240 = vadd.xlane.f32.xlu1 %v239_v11 }
 0x199   :  { %v238_v12 = vmul.f32 %v236_v10, %v236_v10 }
 0x19b   :  { %v242_v13 = vsel %vm225_vm0, %v238_v12, 0.0 }
 0x19c   :  { %243 = vadd.xlane.f32.xlu1 %v242_v13 }
 0x225   :  { %v241_v17 = vpop.xlane.xlu1 %240 }
 0x226   :  { %v245_v18 = vmul.f32 0.03125, %v241_v17 }
 0x228   :  { %v247_v19 = vadd.f32 1e-05, %v245_v18 }
 0x229   :  { %v244_v20 = vpop.xlane.xlu1 %243 }
 0x22a   :  { %1877 = vrsqrt.f32 %v247_v19  ;;  %v246_v21 = vmul.f32 0.03125, %v244_v20 }
 0x22c   :  { %v248_v22 = vadd.f32 1e-05, %v246_v21 }
 0x22e   :  { %1879 = vrsqrt.f32 %v248_v22 }
 0x234   :  { %v1878_v23 = vpop.eup %1877 }
 0x235   :  { %v251_v24 = vmul.f32 %v1878_v23, %v235_v6 }
 0x237   :  { %v259_v28 = vmul.f32 %v1599_v25, %v251_v24 }
 0x238   :  { %v1880_v26 = vpop.eup %1879 }
 0x239   :  { %v252_v27 = vmul.f32 %v1880_v26, %v236_v10  ;;  %v267_v31 = vadd.f32 %v1600_v29, %v259_v28 }
 0x23b   :  { %v260_v30 = vmul.f32 %v1599_v25, %v252_v27 }
 0x23d   :  { %v268_v32 = vadd.f32 %v1600_v29, %v260_v30 }
 0x23f   :  { %v269_v33 = vpack.c.bf16 %v268_v32, %v267_v31 }
 0x241   :  { %1695 = vmatmul.mubr.msk.bf16.vlgmr.msra.gmra.mrb[0].mxu0 %vm225_vm0, %v269_v33 }
 0x242   :  { %1700 = vmatprep.mubr.msk.bf16.mxu0 %vm2288_vm1, %v2287_v15 }
 0x314   :  { %v330_v35 = vpop.f32.mrb[0].mxu0 }
 0x315   :  { %v1696_v36 = vpop.f32.mrb[1].mxu0  ;;  %v331_v38 = vadd.f32 %v1601_v34, %v330_v35 }
 0x316   :  { %v333_v37 = vpop.f32.mrb[2].mxu0 }
 0x317   :  { %v334_v39 = vadd.f32 %v1601_v34, %v333_v37  ;;  %v1697_v40 = vpop.f32.mrb[3].mxu0 }
 0x319   :  { %v2583_v41 = vpack.c.bf16 %v334_v39, %v331_v38 }
 0x31b   :  { %453 = vrot.lane.b32.xlu1 %v2583_v41, %s2289_s13  ;;  %340 = vrot.lane.b32.xlu0 %v2583_v41, %s2290_s8  ;;  %v2592_v42 = vrot.slane %v2583_v41, 4 }
 0x31f   :  { %451 = vrot.lane.b32.xlu1 %v2583_v41, %s2291_s1  ;;  %567 = vrot.lane.b32.xlu0 %v2583_v41, %s2292_s28 }
 0x323   :  { %569 = vrot.lane.b32.xlu1 %v2583_v41, %s2293_s29  ;;  %683 = vrot.lane.b32.xlu0 %v2583_v41, %s2294_s5 }
 0x327   :  { %685 = vrot.lane.b32.xlu1 %v2583_v41, %s2295_s15  ;;  %911 = vrot.lane.b32.xlu0 %v2592_v42, %s2289_s13 }
 0x32b   :  { %1026 = vrot.lane.b32.xlu0 %v2592_v42, %s2293_s29  ;;  %800 = vrot.lane.b32.xlu1 %v2592_v42, %s2290_s8 }
 0x32f   :  { %1141 = vrot.lane.b32.xlu0 %v2592_v42, %s2295_s15  ;;  %909 = vrot.lane.b32.xlu1 %v2592_v42, %s2291_s1 }
 0x333   :  { %399 = vrot.lane.b32.xlu0 %v2583_v41, %s2280_s2  ;;  %1024 = vrot.lane.b32.xlu1 %v2592_v42, %s2292_s28 }
 0x337   :  { %627 = vrot.lane.b32.xlu0 %v2583_v41, %s2296_s16  ;;  %1139 = vrot.lane.b32.xlu1 %v2592_v42, %s2294_s5 }
 0x33b   :  { %511 = vrot.lane.b32.xlu1 %v2583_v41, %s2297_s19 }
 0x38d   :  { %v454_v43 = vpop.permute.xlu1 %453  ;;  %v341_v44 = vpop.permute.xlu0 %340 }
 0x38e   :  { %v347_v45 = vsel %vm342_vm2, %v341_v44, 0  ;;  %v459_v46 = vsel %vm342_vm2, %v454_v43, 0 }
 0x38f   :  { %1699 = vmatpush3.bf16.xpose.msra.mxu0 %v347_v45  ;;  %1711 = vmatpush3.bf16.xpose.msra.mxu1 %v459_v46 }
 0x390   :  { %1722 = vmatprep.subr.bf16.mxu1 %v2287_v15  ;;  %1704 = vmatprep.subr.bf16.mxu0 %v2287_v15 }
 0x391   :  { %v452_v47 = vpop.permute.xlu1 %451  ;;  %v568_v48 = vpop.permute.xlu0 %567 }
 0x395   :  { %v570_v49 = vpop.permute.xlu1 %569  ;;  %v684_v50 = vpop.permute.xlu0 %683 }
 0x396   :  { %v575_v51 = vsel %vm342_vm2, %v570_v49, 0  ;;  %1701 = vmatmul.mubr.msk.bf16.vlgmr.msra.gmra.mrb[4].mxu0 %vm342_vm2, %v2583_v41  ;;  %1713 = vmatmul.mubr.msk.bf16.vlgmr.msra.gmra.mrb[0].mxu1 %vm342_vm2, %v452_v47 }
 0x397   :  { %1723 = vmatpush3.bf16.xpose.msra.mxu1 %v575_v51  ;;  %1724 = vmatprep.mubr.msk.bf16.mxu1 %vm2288_vm1, %v2287_v15 }
 0x398   :  { %1734 = vmatprep.subr.bf16.mxu1 %v2287_v15  ;;  %1706 = vmatprep.mubr.msk.bf16.mxu0 %vm2288_vm1, %v2287_v15 }
 0x399   :  { %v912_v52 = vpop.permute.xlu0 %911  ;;  %v686_v53 = vpop.permute.xlu1 %685 }
 0x39a   :  { %v691_v55 = vsel %vm342_vm2, %v686_v53, 0  ;;  %v917_v61 = vsel %vm342_vm2, %v912_v52, 0 }
 0x39d   :  { %v1027_v54 = vpop.permute.xlu0 %1026  ;;  %v801_v57 = vpop.permute.xlu1 %800 }
 0x39e   :  { %1725 = vmatmul.mubr.msk.bf16.vlgmr.msra.gmra.mrb[4].mxu1 %vm342_vm2, %v568_v48  ;;  %v806_v59 = vsel %vm342_vm2, %v801_v57, 0  ;;  %v1032_v63 = vsel %vm342_vm2, %v1027_v54, 0 }
 0x39f   :  { %1735 = vmatpush3.bf16.xpose.msra.mxu1 %v691_v55  ;;  %1736 = vmatprep.mubr.msk.bf16.mxu1 %vm2288_vm1, %v2287_v15 }
 0x3a0   :  { %1746 = vmatprep.subr.bf16.mxu1 %v2287_v15 }
 0x3a1   :  { %v1142_v56 = vpop.permute.xlu0 %1141  ;;  %v910_v62 = vpop.permute.xlu1 %909 }
 0x3a2   :  { %v1147_v3 = vsel %vm342_vm2, %v1142_v56, 0 }
 0x3a5   :  { %v400_v58 = vpop.permute.xlu0 %399  ;;  %v1025_v2 = vpop.permute.xlu1 %1024 }
 0x3a6   :  { %v406_v60 = vsel %vm404_vm3, %v400_v58, 0  ;;  %1737 = vmatmul.mubr.msk.bf16.vlgmr.msra.gmra.mrb[8].mxu1 %vm342_vm2, %v684_v50 }
 0x3a7   :  { %1705 = vmatpush3.bf16.msra.mxu0 %v406_v60  ;;  %1747 = vmatpush3.bf16.xpose.msra.mxu1 %v806_v59 }
 0x3a8   :  { %1748 = vmatprep.mubr.msk.bf16.mxu1 %vm2288_vm1, %v2287_v15  ;;  %1758 = vmatprep.subr.bf16.mxu1 %v2287_v15 }
 0x3a9   :  { %1716 = vmatprep.subr.bf16.mxu0 %v2287_v15  ;;  %v1140_v4 = vpop.permute.xlu1 %1139  ;;  %v628_v56 = vpop.permute.xlu0 %627 }
 0x3ad   :  { %v512_v57 = vpop.permute.xlu1 %511 }
 0x3ae   :  { %1749 = vmatmul.mubr.msk.bf16.vlgmr.msra.gmra.mrb[12].mxu1 %vm342_vm2, %v2592_v42 }
 0x3af   :  { %1759 = vmatpush3.bf16.xpose.msra.mxu1 %v917_v61  ;;  %1760 = vmatprep.mubr.msk.bf16.mxu1 %vm2288_vm1, %v2287_v15 }
 0x3b0   :  { %1770 = vmatprep.subr.bf16.mxu1 %v2287_v15 }
 0x3b6   :  { %1761 = vmatmul.mubr.msk.bf16.vlgmr.msra.gmra.mrb[16].mxu1 %vm342_vm2, %v910_v62 }
 0x3b7   :  { %1771 = vmatpush3.bf16.xpose.msra.mxu1 %v1032_v63  ;;  %1772 = vmatprep.mubr.msk.bf16.mxu1 %vm2288_vm1, %v2287_v15 }
 0x3b8   :  { %1782 = vmatprep.subr.bf16.mxu1 %v2287_v15 }
 0x3be   :  { %1773 = vmatmul.mubr.msk.bf16.vlgmr.msra.gmra.mrb[20].mxu1 %vm342_vm2, %v1025_v2 }
 0x3bf   :  { %1783 = vmatpush3.bf16.xpose.msra.mxu1 %v1147_v3  ;;  %1784 = vmatprep.mubr.msk.bf16.mxu1 %vm2288_vm1, %v2287_v15 }
 0x3c0   :  { %1794 = vmatprep.subr.bf16.mxu1 %v2287_v15 }
 0x3c6   :  { %1785 = vmatmul.mubr.msk.bf16.vlgmr.msra.gmra.mrb[24].mxu1 %vm342_vm2, %v1140_v4 }
 0x3c7   :  { %1798 = vmatprep.mubr.msk.bf16.mxu1 %vm2288_vm1, %v2287_v15 }
 0x469   :  { %v383_v6 = vpop.f32.mrb[4].mxu0  ;;  %v495_v7 = vpop.f32.mrb[0].mxu1 }
 0x46a   :  { %v2652_v8 = vadd.f32 %v383_v6, %v338_v5  ;;  %v2654_v9 = vadd.f32 %v495_v7, %v338_v5  ;;  %v1702_v10 = vpop.f32.mrb[5].mxu0  ;;  %v1714_v11 = vpop.f32.mrb[1].mxu1 }
 0x46b   :  { %v386_v12 = vpop.f32.mrb[6].mxu0  ;;  %v498_v13 = vpop.f32.mrb[2].mxu1 }
 0x46c   :  { %v1703_v14 = vpop.f32.mrb[7].mxu0  ;;  %v1715_v16 = vpop.f32.mrb[3].mxu1  ;;  %v501_v17 = vsel %vm342_vm2, %v2654_v9, -inf  ;;  %v389_v18 = vsel %vm342_vm2, %v2652_v8, -inf }
 0x46d   :  { %502 = vmax.xlane.f32.xlu1 %v501_v17  ;;  %390 = vmax.xlane.f32.xlu0 %v389_v18  ;;  %v633_v16 = vsel %vm404_vm3, %v628_v56, 0 }
 0x471   :  { %v611_v19 = vpop.f32.mrb[4].mxu1 }
 0x472   :  { %v612_v20 = vadd.f32 %v611_v19, %v338_v5  ;;  %v1726_v21 = vpop.f32.mrb[5].mxu1 }
 0x473   :  { %v614_v22 = vpop.f32.mrb[6].mxu1 }
 0x474   :  { %v1727_v23 = vpop.f32.mrb[7].mxu1  ;;  %v617_v24 = vsel %vm342_vm2, %v612_v20, -inf }
 0x475   :  { %618 = vmax.xlane.f32.xlu0 %v617_v24 }
 0x479   :  { %v727_v25 = vpop.f32.mrb[8].mxu1 }
 0x47a   :  { %v2661_v26 = vadd.f32 %v727_v25, %v338_v5  ;;  %v1738_v27 = vpop.f32.mrb[9].mxu1 }
 0x47b   :  { %v730_v28 = vpop.f32.mrb[10].mxu1 }
 0x47c   :  { %v1739_v29 = vpop.f32.mrb[11].mxu1  ;;  %v733_v30 = vsel %vm342_vm2, %v2661_v26, -inf }
 0x47d   :  { %734 = vmax.xlane.f32.xlu0 %v733_v30 }
 0x47e   :  { %858 = vrot.lane.b32.xlu1 %v2592_v42, %s2280_s2  ;;  %s2299_s2 = smov 16  }
 0x481   :  { %v842_v31 = vpop.f32.mrb[12].mxu1 }
 0x482   :  { %v1750_v32 = vpop.f32.mrb[13].mxu1  ;;  %v2672_v51 = vadd.f32 %v842_v31, %v338_v5 }
 0x483   :  { %v845_v33 = vpop.f32.mrb[14].mxu1 }
 0x484   :  { %v1751_v34 = vpop.f32.mrb[15].mxu1  ;;  %v848_v53 = vsel %vm342_vm2, %v2672_v51, -inf }
 0x489   :  { %v953_v35 = vpop.f32.mrb[16].mxu1 }
 0x48a   :  { %v1762_v36 = vpop.f32.mrb[17].mxu1  ;;  %v2674_v52 = vadd.f32 %v953_v35, %v338_v5 }
 0x48b   :  { %v956_v37 = vpop.f32.mrb[18].mxu1 }
 0x48c   :  { %v1763_v38 = vpop.f32.mrb[19].mxu1  ;;  %v959_v54 = vsel %vm342_vm2, %v2674_v52, -inf }
 0x491   :  { %v1068_v39 = vpop.f32.mrb[20].mxu1 }
 0x492   :  { %v2667_v40 = vadd.f32 %v1068_v39, %v338_v5  ;;  %v1774_v43 = vpop.f32.mrb[21].mxu1 }
 0x493   :  { %v1071_v44 = vpop.f32.mrb[22].mxu1  ;;  %743 = vrot.lane.b32.xlu0 %v2583_v41, %s2298_s9 }
 0x494   :  { %v1775_v45 = vpop.f32.mrb[23].mxu1  ;;  %v1074_v41 = vsel %vm342_vm2, %v2667_v40, -inf }
 0x499   :  { %v1183_v46 = vpop.f32.mrb[24].mxu1 }
 0x49a   :  { %v2670_v47 = vadd.f32 %v1183_v46, %v338_v5  ;;  %v1786_v48 = vpop.f32.mrb[25].mxu1 }
 0x49b   :  { %v1186_v49 = vpop.f32.mrb[26].mxu1 }
 0x49c   :  { %v1787_v50 = vpop.f32.mrb[27].mxu1  ;;  %v1189_v55 = vsel %vm342_vm2, %v2670_v47, -inf }
 0x4a2   :  { %849 = vmax.xlane.f32.xlu1 %v848_v53 }
 0x4a6   :  { %960 = vmax.xlane.f32.xlu1 %v959_v54 }
 0x4b2   :  { %1075 = vmax.xlane.f32.xlu0 %v1074_v41 }
 0x4b7   :  { %969 = vrot.lane.b32.xlu1 %v2592_v42, %s2297_s19 }
 0x4c8   :  { %1084 = vrot.lane.b32.xlu0 %v2592_v42, %s2296_s16 }
 0x4db   :  { %1190 = vmax.xlane.f32.xlu1 %v1189_v55 }
 0x4ec   :  { %1199 = vrot.lane.b32.xlu1 %v2592_v42, %s2298_s9 }
 0x4fa   :  { %v503_v58 = vpop.xlane.xlu1 %502  ;;  %v391_v59 = vpop.xlane.xlu0 %390 }
 0x4fb   :  { %v504_v60 = vsub.f32 %v2654_v9, %v503_v58  ;;  %v392_v61 = vsub.f32 %v2652_v8, %v391_v59  ;;  %v517_v8 = vsel %vm404_vm3, %v512_v57, 0 }
 0x4fd   :  { %v505_v62 = vmul.f32 1.442695, %v504_v60  ;;  %v393_v63 = vmul.f32 1.442695, %v392_v61 }
 0x4fe   :  { %v859_v21 = vpop.permute.xlu1 %858 }
 0x4ff   :  { %1881 = vpow2.f32 %v505_v62  ;;  %v864_v23 = vsel %vm404_vm3, %v859_v21, 0 }
 0x500   :  { %1883 = vpow2.f32 %v393_v63 }
 0x502   :  { %v619_v2 = vpop.xlane.xlu0 %618 }
 0x503   :  { %v620_v3 = vsub.f32 %v612_v20, %v619_v2 }
 0x505   :  { %v621_v4 = vmul.f32 1.442695, %v620_v3 }
 0x507   :  { %1885 = vpow2.f32 %v621_v4 }
 0x509   :  { %v1882_v5 = vpop.eup %1881 }
 0x50a   :  { %v2691_v6 = vpop.eup %1883  ;;  %v507_v42 = vsel %vm342_vm2, %v1882_v5, 0.0  ;;  %v735_v7 = vpop.xlane.xlu0 %734  ;;  %v510_v14 = vpack.c.bf16 %v1882_v5, %v1882_v5 }
 0x50b   :  { %508 = vadd.xlane.f32.xlu0 %v507_v42  ;;  %v398_v9 = vpack.c.bf16 %v2691_v6, %v2691_v6  ;;  %v736_v10 = vsub.f32 %v2661_v26, %v735_v7  ;;  %v395_v49 = vsel %vm342_vm2, %v2691_v6, 0.0 }
 0x50d   :  { %1707 = vmatmul.mubr.msk.bf16.vlgmr.msra.gmra.mrb[8].mxu0 %vm342_vm2, %v398_v9  ;;  %v737_v12 = vmul.f32 1.442695, %v736_v10 }
 0x50e   :  { %1717 = vmatpush3.bf16.msra.mxu0 %v517_v8  ;;  %1718 = vmatprep.mubr.msk.bf16.mxu0 %vm2288_vm1, %v2287_v15  ;;  %v744_v17 = vpop.permute.xlu0 %743 }
 0x50f   :  { %1728 = vmatprep.subr.bf16.mxu0 %v2287_v15  ;;  %1887 = vpow2.f32 %v737_v12  ;;  %v749_v19 = vsel %vm404_vm3, %v744_v17, 0 }
 0x511   :  { %v1886_v11 = vpop.eup %1885 }
 0x512   :  { %v623_v13 = vsel %vm342_vm2, %v1886_v11, 0.0  ;;  %v626_v18 = vpack.c.bf16 %v1886_v11, %v1886_v11 }
 0x513   :  { %624 = vadd.xlane.f32.xlu0 %v623_v13 }
 0x515   :  { %1719 = vmatmul.mubr.msk.bf16.vlgmr.msra.gmra.mrb[12].mxu0 %vm342_vm2, %v510_v14 }
 0x516   :  { %1729 = vmatpush3.bf16.msra.mxu0 %v633_v16  ;;  %1730 = vmatprep.mubr.msk.bf16.mxu0 %vm2288_vm1, %v2287_v15 }
 0x517   :  { %1740 = vmatprep.subr.bf16.mxu0 %v2287_v15 }
 0x519   :  { %v1888_v20 = vpop.eup %1887 }
 0x51a   :  { %v742_v22 = vpack.c.bf16 %v1888_v20, %v1888_v20  ;;  %v739_v48 = vsel %vm342_vm2, %v1888_v20, 0.0 }
 0x51d   :  { %1731 = vmatmul.mubr.msk.bf16.vlgmr.msra.gmra.mrb[16].mxu0 %vm342_vm2, %v626_v18 }
 0x51e   :  { %1741 = vmatpush3.bf16.msra.mxu0 %v749_v19  ;;  %1742 = vmatprep.mubr.msk.bf16.mxu0 %vm2288_vm1, %v2287_v15 }
 0x51f   :  { %1752 = vmatprep.subr.bf16.mxu0 %v2287_v15 }
 0x525   :  { %1743 = vmatmul.mubr.msk.bf16.vlgmr.msra.gmra.mrb[20].mxu0 %vm342_vm2, %v742_v22 }
 0x526   :  { %1753 = vmatpush3.bf16.msra.mxu0 %v864_v23  ;;  %1754 = vmatprep.mubr.msk.bf16.mxu0 %vm2288_vm1, %v2287_v15 }
 0x527   :  { %1764 = vmatprep.subr.bf16.mxu0 %v2287_v15 }
 0x52f   :  { %v850_v24 = vpop.xlane.xlu1 %849 }
 0x530   :  { %v851_v25 = vsub.f32 %v2672_v51, %v850_v24 }
 0x532   :  { %v852_v26 = vmul.f32 1.442695, %v851_v25 }
 0x533   :  { %v961_v27 = vpop.xlane.xlu1 %960 }
 0x534   :  { %1889 = vpow2.f32 %v852_v26  ;;  %v962_v28 = vsub.f32 %v2674_v52, %v961_v27 }
 0x536   :  { %v963_v29 = vmul.f32 1.442695, %v962_v28 }
 0x537   :  { %v970_v31 = vpop.permute.xlu1 %969 }
 0x538   :  { %1891 = vpow2.f32 %v963_v29  ;;  %v975_v35 = vsel %vm404_vm3, %v970_v31, 0 }
 0x53e   :  { %v1890_v30 = vpop.eup %1889 }
 0x53f   :  { %v1076_v32 = vpop.xlane.xlu0 %1075  ;;  %v857_v33 = vpack.c.bf16 %v1890_v30, %v1890_v30 }
 0x540   :  { %v1077_v34 = vsub.f32 %v2667_v40, %v1076_v32 }
 0x541   :  { %1755 = vmatmul.mubr.msk.bf16.vlgmr.msra.gmra.mrb[24].mxu0 %vm342_vm2, %v857_v33 }
 0x542   :  { %v1892_v36 = vpop.eup %1891  ;;  %v1078_v37 = vmul.f32 1.442695, %v1077_v34  ;;  %1765 = vmatpush3.bf16.msra.mxu0 %v975_v35  ;;  %1766 = vmatprep.mubr.msk.bf16.mxu0 %vm2288_vm1, %v2287_v15 }
 0x543   :  { %v965_v38 = vsel %vm342_vm2, %v1892_v36, 0.0  ;;  %1776 = vmatprep.subr.bf16.mxu0 %v2287_v15  ;;  %v1085_v39 = vpop.permute.xlu0 %1084  ;;  %v968_v43 = vpack.c.bf16 %v1892_v36, %v1892_v36 }
 0x544   :  { %1893 = vpow2.f32 %v1078_v37  ;;  %966 = vadd.xlane.f32.xlu1 %v965_v38  ;;  %v1090_v40 = vsel %vm404_vm3, %v1085_v39, 0 }
 0x549   :  { %1767 = vmatmul.mubr.msk.bf16.vlgmr.msra.gmra.mrb[28].mxu0 %vm342_vm2, %v968_v43 }
 0x54a   :  { %1777 = vmatpush3.bf16.msra.mxu0 %v1090_v40  ;;  %1778 = vmatprep.mubr.msk.bf16.mxu0 %vm2288_vm1, %v2287_v15 }
 0x54b   :  { %1788 = vmatprep.subr.bf16.mxu0 %v2287_v15 }
 0x54e   :  { %v1894_v44 = vpop.eup %1893 }
 0x54f   :  { %v1080_v45 = vsel %vm342_vm2, %v1894_v44, 0.0  ;;  %v1083_v46 = vpack.c.bf16 %v1894_v44, %v1894_v44 }
 0x550   :  { %1081 = vadd.xlane.f32.xlu0 %v1080_v45 }
 0x551   :  { %1779 = vmatmul.mubr.msk.bf16.vlgmr.msra.gmra.mrb[32].mxu0 %vm342_vm2, %v1083_v46 }
 0x552   :  { %1790 = vmatprep.mubr.msk.bf16.mxu0 %vm2288_vm1, %v2287_v15 }
 0x554   :  { %740 = vadd.xlane.f32.xlu0 %v739_v48  ;;  %v1865_v48 = vld [vmem:[#allocation15] sm:$0xff]  }
 0x555   :  { %1795 = vmatpush3.bf16.msra.mxu1 %v1865_v48  ;;  %v1872_v48 = vld [vmem:[#allocation24 + $0x18] sm:$0xff]  }
 0x556   :  { %1796 = vmatprep.subr.bf16.mxu1 %v2287_v15 }
 0x558   :  { %396 = vadd.xlane.f32.xlu0 %v395_v49  ;;  %v1866_v49 = vld [vmem:[#allocation15 + $0x8] sm:$0xff]  }
 0x559   :  { %1797 = vmatpush3.bf16.msra.mxu1 %v1866_v49  ;;  %v1873_v49 = vld [vmem:[#allocation24 + $0x20] sm:$0xff]  }
 0x55a   :  { %1810 = vmatprep.subr.bf16.mxu1 %v2287_v15 }
 0x568   :  { %v1191_v50 = vpop.xlane.xlu1 %1190 }
 0x569   :  { %v1192_v51 = vsub.f32 %v2670_v47, %v1191_v50  ;;  %v854_v47 = vsel %vm342_vm2, %v1890_v30, 0.0 }
 0x56b   :  { %v1193_v52 = vmul.f32 1.442695, %v1192_v51 }
 0x56c   :  { %v1200_v53 = vpop.permute.xlu1 %1199 }
 0x56d   :  { %1895 = vpow2.f32 %v1193_v52  ;;  %v1205_v54 = vsel %vm404_vm3, %v1200_v53, 0 }
 0x56e   :  { %1789 = vmatpush3.bf16.msra.mxu0 %v1205_v54 }
 0x56f   :  { %1802 = vmatprep.subr.bf16.mxu0 %v2287_v15 }
 0x577   :  { %v1896_v41 = vpop.eup %1895 }
 0x578   :  { %v1195_v55 = vsel %vm342_vm2, %v1896_v41, 0.0  ;;  %v1198_v56 = vpack.c.bf16 %v1896_v41, %v1896_v41 }
 0x579   :  { %1196 = vadd.xlane.f32.xlu1 %v1195_v55 }
 0x57a   :  { %1791 = vmatmul.mubr.msk.bf16.vlgmr.msra.gmra.mrb[36].mxu0 %vm342_vm2, %v1198_v56 }
 0x57b   :  { %1806 = vmatprep.mubr.msk.bf16.mxu0 %vm2288_vm1, %v2287_v15 }
 0x57d   :  { %855 = vadd.xlane.f32.xlu1 %v854_v47 }
 0x598   :  { %v509_v57 = vpop.xlane.xlu0 %508 }
 0x599   :  { %1897 = vrcp.f32 %v509_v57 }
 0x5a0   :  { %v625_v58 = vpop.xlane.xlu0 %624 }
 0x5a1   :  { %1899 = vrcp.f32 %v625_v58 }
 0x5a3   :  { %v1898_v4 = vpop.eup %1897 }
 0x5ab   :  { %v1900_v8 = vpop.eup %1899 }
 0x5d1   :  { %v967_v24 = vpop.xlane.xlu1 %966 }
 0x5dd   :  { %v1082_v59 = vpop.xlane.xlu0 %1081 }
 0x5e0   :  { %v442_v60 = vpop.f32.mrb[8].mxu0 }
 0x5e1   :  { %v1708_v61 = vpop.f32.mrb[9].mxu0  ;;  %v741_v62 = vpop.xlane.xlu0 %740 }
 0x5e2   :  { %v445_v63 = vpop.f32.mrb[10].mxu0 }
 0x5e3   :  { %v1709_v2 = vpop.f32.mrb[11].mxu0  ;;  %v1621_v63 = vld [vmem:[#allocation16] ss:$0 sm:$0xff] }
 0x5e5   :  { %v397_v3 = vpop.xlane.xlu0 %396 }
 0x5e6   :  { %1901 = vrcp.f32 %v397_v3 }
 0x5e7   :  { %1903 = vrcp.f32 %v741_v62 }
 0x5e8   :  { %v553_v5 = vpop.f32.mrb[12].mxu0 }
 0x5e9   :  { %v560_v6 = vmul.f32 %v1898_v4, %v553_v5  ;;  %v1720_v42 = vpop.f32.mrb[13].mxu0  ;;  %v1627_v5 = vld [vmem:[#allocation25] ss:$0 sm:$0xff] }
 0x5ea   :  { %v556_v7 = vpop.f32.mrb[14].mxu0 }
 0x5eb   :  { %562 = vrot.lane.b32.xlu0 %v560_v6, %s2277_s3  ;;  %v1721_v9 = vpop.f32.mrb[15].mxu0 }
 0x5f0   :  { %v1902_v10 = vpop.eup %1901  ;;  %v669_v11 = vpop.f32.mrb[16].mxu0 }
 0x5f1   :  { %v449_v12 = vmul.f32 %v1902_v10, %v442_v60  ;;  %v676_v13 = vmul.f32 %v1900_v8, %v669_v11  ;;  %v1732_v14 = vpop.f32.mrb[17].mxu0  ;;  %v1904_v18 = vpop.eup %1903 }
 0x5f2   :  { %v672_v16 = vpop.f32.mrb[18].mxu0 }
 0x5f3   :  { %450 = vst.msk [vmem:[#allocation2] sm:$0xff] %vm342_vm2, %v449_v12  ;;  %678 = vrot.lane.b32.xlu1 %v676_v13, %s2299_s2  ;;  %v1733_v17 = vpop.f32.mrb[19].mxu0 }
 0x5f8   :  { %v785_v19 = vpop.f32.mrb[20].mxu0 }
 0x5f9   :  { %v792_v20 = vmul.f32 %v1904_v18, %v785_v19  ;;  %v1744_v21 = vpop.f32.mrb[21].mxu0 }
 0x5fa   :  { %v788_v22 = vpop.f32.mrb[22].mxu0 }
 0x5fb   :  { %794 = vrot.lane.b32.xlu0 %v792_v20, %s2300_s20  ;;  %v1745_v23 = vpop.f32.mrb[23].mxu0 }
 0x5fc   :  { %v1867_v23 = vld [vmem:[#allocation21] sm:$0xff]  }
 0x5fd   :  { %1803 = vmatpush3.bf16.msra.mxu0 %v1867_v23 }
 0x5fe   :  { %1804 = vmatprep.subr.bf16.mxu0 %v2287_v15 }
 0x606   :  { %v1197_v25 = vpop.xlane.xlu1 %1196 }
 0x60a   :  { %v856_v26 = vpop.xlane.xlu1 %855 }
 0x60b   :  { %1905 = vrcp.f32 %v856_v26  ;;  %v1870_v26 = vld [vmem:[#allocation24 + $0x8] sm:$0xff]  }
 0x60c   :  { %1907 = vrcp.f32 %v967_v24  ;;  %v1868_v24 = vld [vmem:[#allocation21 + $0x8] sm:$0xff]  }
 0x60d   :  { %1909 = vrcp.f32 %v1082_v59  ;;  %1805 = vmatpush3.bf16.msra.mxu0 %v1868_v24 }
 0x60e   :  { %1911 = vrcp.f32 %v1197_v25  ;;  %v1869_v25 = vld [vmem:[#allocation24] sm:$0xff]  }
 0x614   :  { %v900_v27 = vpop.f32.mrb[24].mxu0 }
 0x615   :  { %v1906_v28 = vpop.eup %1905  ;;  %v1756_v29 = vpop.f32.mrb[25].mxu0 }
 0x616   :  { %v907_v30 = vmul.f32 %v1906_v28, %v900_v27  ;;  %v903_v31 = vpop.f32.mrb[26].mxu0  ;;  %v1908_v33 = vpop.eup %1907 }
 0x617   :  { %v1757_v32 = vpop.f32.mrb[27].mxu0  ;;  %v1910_v39 = vpop.eup %1909 }
 0x618   :  { %908 = vst.msk [vmem:[#allocation2 + $0x8] sm:$0xff] %vm342_vm2, %v907_v30  ;;  %v1912_v50 = vpop.eup %1911 }
 0x61c   :  { %v1011_v34 = vpop.f32.mrb[28].mxu0 }
 0x61d   :  { %v1018_v35 = vmul.f32 %v1908_v33, %v1011_v34  ;;  %v1768_v36 = vpop.f32.mrb[29].mxu0 }
 0x61e   :  { %v1014_v37 = vpop.f32.mrb[30].mxu0 }
 0x61f   :  { %1020 = vrot.lane.b32.xlu1 %v1018_v35, %s2277_s3  ;;  %v1769_v38 = vpop.f32.mrb[31].mxu0  ;;  %v1625_v35 = vld [vmem:[#allocation18] ss:$0 sm:$0xff] }
 0x624   :  { %v1126_v43 = vpop.f32.mrb[32].mxu0 }
 0x625   :  { %v1133_v40 = vmul.f32 %v1910_v39, %v1126_v43  ;;  %v1780_v44 = vpop.f32.mrb[33].mxu0  ;;  %v1626_v39 = vld [vmem:[#allocation19] ss:$0 sm:$0xff] }
 0x626   :  { %v1129_v45 = vpop.f32.mrb[34].mxu0 }
 0x627   :  { %1135 = vrot.lane.b32.xlu1 %v1133_v40, %s2299_s2  ;;  %v1781_v46 = vpop.f32.mrb[35].mxu0 }
 0x628   :  { %v1871_v46 = vld [vmem:[#allocation24 + $0x10] sm:$0xff]  }
 0x64d   :  { %v1241_v51 = vpop.f32.mrb[36].mxu0 }
 0x64e   :  { %v1248_v52 = vmul.f32 %v1912_v50, %v1241_v51  ;;  %v1792_v53 = vpop.f32.mrb[37].mxu0  ;;  %v1874_v50 = vld [vmem:[#allocation24 + $0x28] sm:$0xff]   ;;  %v1875_v51 = vld [vmem:[#allocation24 + $0x30] sm:$0xff]  }
 0x64f   :  { %v1244_v54 = vpop.f32.mrb[38].mxu0  ;;  %v1628_v53 = vld [vmem:[#allocation22] ss:$0 sm:$0xff] }
 0x650   :  { %1250 = vrot.lane.b32.xlu1 %v1248_v52, %s2300_s20  ;;  %v1793_v41 = vpop.f32.mrb[39].mxu0  ;;  %v1876_v52 = vld [vmem:[#allocation24 + $0x38] sm:$0xff]  }
 0x65d   :  { %v563_v55 = vpop.permute.xlu0 %562 }
 0x65e   :  { %566 = vst.msk [vmem:[#allocation2] sm:$0xff] %vm565_vm4, %v563_v55 }
 0x665   :  { %v679_v56 = vpop.permute.xlu1 %678 }
 0x666   :  { %682 = vst.msk [vmem:[#allocation2] sm:$0xff] %vm681_vm5, %v679_v56 }
 0x66d   :  { %v795_v47 = vpop.permute.xlu0 %794 }
 0x66e   :  { %798 = vst.msk [vmem:[#allocation2] sm:$0xff] %vm797_vm6, %v795_v47 }
 0x675   :  { %v1254_v60 = vld [vmem:[#allocation2] sm:$0xff] }
 0x691   :  { %v1021_v57 = vpop.permute.xlu1 %1020 }
 0x692   :  { %1023 = vst.msk [vmem:[#allocation2 + $0x8] sm:$0xff] %vm565_vm4, %v1021_v57 }
 0x699   :  { %v1136_v58 = vpop.permute.xlu1 %1135 }
 0x69a   :  { %1138 = vst.msk [vmem:[#allocation2 + $0x8] sm:$0xff] %vm681_vm5, %v1136_v58 }
 0x6c2   :  { %v1251_v59 = vpop.permute.xlu1 %1250 }
 0x6c3   :  { %1253 = vst.msk [vmem:[#allocation2 + $0x8] sm:$0xff] %vm797_vm6, %v1251_v59 }
 0x6ca   :  { %v1255_v61 = vld [vmem:[#allocation2 + $0x8] sm:$0xff] }
 0x6cb   :  { %v1256_v62 = vpack.c.bf16 %v1255_v61, %v1254_v60 }
 0x6cd   :  { %1799 = vmatmul.mubr.msk.bf16.vlgmr.msra.gmra.mrb[28].mxu1 %vm225_vm0, %v1256_v62 }
 0x6ce   :  { %1826 = vmatprep.mubr.msk.bf16.mxu1 %vm2288_vm1, %v2287_v15  ;;  %1811 = vmatpush3.bf16.msra.mxu1 %v1869_v25 }
 0x6cf   :  { %1812 = vmatprep.subr.bf16.mxu1 %v2287_v15 }
 0x6d2   :  { %1813 = vmatpush3.bf16.msra.mxu1 %v1870_v26 }
 0x6d3   :  { %1814 = vmatprep.subr.bf16.mxu1 %v2287_v15 }
 0x6d6   :  { %1815 = vmatpush3.bf16.msra.mxu1 %v1871_v46 }
 0x6d7   :  { %1816 = vmatprep.subr.bf16.mxu1 %v2287_v15 }
 0x6da   :  { %1817 = vmatpush3.bf16.msra.mxu1 %v1872_v48 }
 0x6db   :  { %1818 = vmatprep.subr.bf16.mxu1 %v2287_v15 }
 0x6de   :  { %1819 = vmatpush3.bf16.msra.mxu1 %v1873_v49 }
 0x6df   :  { %1820 = vmatprep.subr.bf16.mxu1 %v2287_v15 }
 0x6e2   :  { %1821 = vmatpush3.bf16.msra.mxu1 %v1874_v50 }
 0x6e3   :  { %1822 = vmatprep.subr.bf16.mxu1 %v2287_v15 }
 0x6e6   :  { %1823 = vmatpush3.bf16.msra.mxu1 %v1875_v51 }
 0x6e7   :  { %1824 = vmatprep.subr.bf16.mxu1 %v2287_v15 }
 0x6ea   :  { %1825 = vmatpush3.bf16.msra.mxu1 %v1876_v52 }
 0x7a0   :  { %v1317_v2 = vpop.f32.mrb[28].mxu1 }
 0x7a1   :  { %v1318_v3 = vadd.f32 %v1621_v63, %v1317_v2  ;;  %v1800_v4 = vpop.f32.mrb[29].mxu1 }
 0x7a2   :  { %v1320_v6 = vpop.f32.mrb[30].mxu1 }
 0x7a3   :  { %v1324_v42 = vadd.f32 %v1318_v3, %v2560_v0  ;;  %v1321_v7 = vadd.f32 %v1621_v63, %v1320_v6  ;;  %v1801_v9 = vpop.f32.mrb[31].mxu1 }
 0x7a5   :  { %v1378_v8 = vadd.f32 %v1627_v5, %v1324_v42  ;;  %v1325_v10 = vadd.f32 %v1321_v7, %v2562_v1  ;;  %v1328_v11 = vsel %vm225_vm0, %v1324_v42, 0.0 }
 0x7a6   :  { %1329 = vadd.xlane.f32.xlu0 %v1328_v11 }
 0x7a7   :  { %1380 = vst.msk [vmem:[#allocation3] sm:$0xff] %vm225_vm0, %v1378_v8  ;;  %v1379_v12 = vadd.f32 %v1627_v5, %v1325_v10  ;;  %v1331_v13 = vsel %vm225_vm0, %v1325_v10, 0.0 }
 0x7a8   :  { %1332 = vadd.xlane.f32.xlu1 %v1331_v13 }
 0x7a9   :  { %1381 = vst.msk [vmem:[#allocation3 + $0x8] sm:$0xff] %vm225_vm0, %v1379_v12 }
 0x7ae   :  { %v1459_v6 = vld [vmem:[#allocation3] sm:$0xff] }
 0x7b0   :  { %v1460_v8 = vld [vmem:[#allocation3 + $0x8] sm:$0xff] }
 0x833   :  { %v1330_v14 = vpop.xlane.xlu0 %1329 }
 0x834   :  { %v1334_v16 = vmul.f32 0.03125, %v1330_v14 }
 0x835   :  { %v1333_v17 = vpop.xlane.xlu1 %1332 }
 0x836   :  { %v1336_v0 = vsub.f32 %v1324_v42, %v1334_v16  ;;  %v1335_v18 = vmul.f32 0.03125, %v1333_v17 }
 0x838   :  { %v1337_v19 = vsub.f32 %v1325_v10, %v1335_v18  ;;  %v1338_v20 = vmul.f32 %v1336_v0, %v1336_v0 }
 0x83a   :  { %v1340_v1 = vsel %vm225_vm0, %v1338_v20, 0.0  ;;  %v1339_v21 = vmul.f32 %v1337_v19, %v1337_v19 }
 0x83b   :  { %1341 = vadd.xlane.f32.xlu0 %v1340_v1 }
 0x83c   :  { %v1343_v22 = vsel %vm225_vm0, %v1339_v21, 0.0 }
 0x83f   :  { %1344 = vadd.xlane.f32.xlu0 %v1343_v22 }
 0x8c8   :  { %v1342_v27 = vpop.xlane.xlu0 %1341 }
 0x8c9   :  { %v1346_v28 = vmul.f32 0.03125, %v1342_v27 }
 0x8cb   :  { %v1348_v29 = vadd.f32 1e-05, %v1346_v28 }
 0x8cc   :  { %v1345_v30 = vpop.xlane.xlu0 %1344 }
 0x8cd   :  { %1913 = vrsqrt.f32 %v1348_v29  ;;  %v1347_v31 = vmul.f32 0.03125, %v1345_v30 }
 0x8cf   :  { %v1349_v32 = vadd.f32 1e-05, %v1347_v31 }
 0x8d1   :  { %1915 = vrsqrt.f32 %v1349_v32 }
 0x8d7   :  { %v1914_v33 = vpop.eup %1913 }
 0x8d8   :  { %v1352_v34 = vmul.f32 %v1914_v33, %v1336_v0 }
 0x8da   :  { %v1360_v37 = vmul.f32 %v1625_v35, %v1352_v34 }
 0x8db   :  { %v1916_v36 = vpop.eup %1915 }
 0x8dc   :  { %v1353_v38 = vmul.f32 %v1916_v36, %v1337_v19  ;;  %v1368_v40 = vadd.f32 %v1626_v39, %v1360_v37 }
 0x8de   :  { %v1361_v43 = vmul.f32 %v1625_v35, %v1353_v38 }
 0x8e0   :  { %v1369_v44 = vadd.f32 %v1626_v39, %v1361_v43 }
 0x8e2   :  { %v1370_v45 = vpack.c.bf16 %v1369_v44, %v1368_v40 }
 0x8e4   :  { %1807 = vmatmul.mubr.msk.bf16.vlgmr.msra.gmra.mrb[40].mxu0 %vm225_vm0, %v1370_v45 }
 0x9b7   :  { %v1442_v54 = vpop.f32.mrb[40].mxu0 }
 0x9b8   :  { %v1443_v41 = vadd.f32 %v1628_v53, %v1442_v54  ;;  %v1808_v55 = vpop.f32.mrb[41].mxu0 }
 0x9b9   :  { %v1445_v56 = vpop.f32.mrb[42].mxu0 }
 0x9ba   :  { %v1451_v47 = vmul.f32 0.70710677, %v1443_v41  ;;  %v1446_v57 = vadd.f32 %v1628_v53, %v1445_v56  ;;  %v1809_v58 = vpop.f32.mrb[43].mxu0  ;;  %v1449_v63 = vmul.f32 0.5, %v1443_v41 }
 0x9bc   :  { %1917 = verf.f32 %v1451_v47  ;;  %v1452_v59 = vmul.f32 0.70710677, %v1446_v57  ;;  %v1450_v2 = vmul.f32 0.5, %v1446_v57 }
 0x9be   :  { %1919 = verf.f32 %v1452_v59 }
 0x9c6   :  { %v1918_v60 = vpop.eup %1917 }
 0x9c7   :  { %v1455_v61 = vadd.f32 1.0, %v1918_v60 }
 0x9c8   :  { %v1920_v62 = vpop.eup %1919 }
 0x9c9   :  { %v1456_v3 = vadd.f32 1.0, %v1920_v62  ;;  %v1457_v15 = vmul.f32 %v1455_v61, %v1449_v63 }
 0x9cb   :  { %v1458_v4 = vmul.f32 %v1456_v3, %v1450_v2 }
 0x9cd   :  { %v1461_v5 = vpack.c.bf16 %v1458_v4, %v1457_v15 }
 0x9cf   :  { %1827 = vmatmul.mubr.bf16.vlgmr.msra.gmra.mrb[32].mxu1 %v1461_v5 }
 0xaa2   :  { %v1560_v42 = vpop.f32.mrb[32].mxu1 }
 0xaa3   :  { %v1567_v7 = vadd.f32 %v1560_v42, %v1459_v6  ;;  %v1828_v9 = vpop.f32.mrb[33].mxu1 }
 0xaa4   :  { %v1563_v10 = vpop.f32.mrb[34].mxu1 }
 0xaa5   :  { %1569 = vst.msk [vmem:[#allocation3] sm:$0xff] %vm225_vm0, %v1567_v7  ;;  %v1568_v11 = vadd.f32 %v1563_v10, %v1460_v8  ;;  %v1829_v12 = vpop.f32.mrb[35].mxu1 }
 0xaa7   :  { %1570 = vst.msk [vmem:[#allocation3 + $0x8] sm:$0xff] %vm225_vm0, %v1568_v11 }
 0xaac   :  { %v1571_v13 = vld [vmem:[#allocation3] sm:$0xff] }
 0xaad   :  { %1573 = vst.msk [vmem:[#allocation27] sm:$0xff] %vm225_vm0, %v1571_v13 }
 0xaae   :  { %v1572_v14 = vld [vmem:[#allocation3 + $0x8] sm:$0xff] }
 0xaaf   :  { %1574 = vst.msk [vmem:[#allocation27 + $0x8] sm:$0xff] %vm225_vm0, %v1572_v14 }
 0xab0   :  { %2240 = shalt.err (!%p2237_p4)
}
 0xab1   :  { %s2241_s21 = scalar_lea.hbm %s2810_s14, 256 }
 0xab2   :  { %p2242_p5 = scmp.ne.s32.totalorder %s2810_s14, %s2241_s21  ;;  %p2245_p6 = scmp.lt.u32.totalorder %s2241_s21, %s2810_s14 }
 0xab4   :  { %p2247_p7 = pnand %p2245_p6, %p2242_p5 }
 0xab6   :  { %2250 = shalt.err (!%p2247_p7)
}
 0xab7   :  { %1586 = dma.vmem_to_hbm [thread:$0]  %s1581_s10, 256, %s2810_s14, [#allocation6], %s2276_s11, %s2276_s11, %s2277_s3  }
 0xab8   :  { %2267 = dma.done.wait [#allocation6], 256  }
 0xab9   :  { %2268 = vsyncadd [#allocation6], 4294967040 }
 0xaba   :  { %1590 = vsyncpa [#allocation5], 1 }
 0xabb   :  { %1591 = vsyncpa [#allocation8], 1 }
 0xabc   :  { %1592 = vsyncpa [#allocation11], 1 }
 0xabd   :  { %1593 = vsyncpa [#allocation14], 1 }
 0xabe   :  { %1594 = vsyncpa [#allocation17], 1 }
 0xabf   :  { %1595 = vsyncpa [#allocation20], 1 }
 0xac0   :  { %1596 = vsyncpa [#allocation23], 1 }
 0xac1   :  { %1597 = vsyncpa [#allocation26], 1 }
 0xac2   :  { %1598 = vsyncpa [#allocation6], 1 }

</bundles_post_ra>
